<compile_context>
chip_gen: v7x
topology: tpu7x:2x2x1
jax: 0.10.0
libtpu: 0.0.40
codegen_flags: <defaults>
</compile_context>

<pallas_src>
import functools

import numpy as np
import jax
import jax.numpy as jnp
from jax.experimental import pallas as pl
from jax.experimental.pallas import tpu as pltpu

_BIG = 1e9            # sentinel: "no opposite-class pixel found (yet)"
_PAD_COORD = 65536.0  # coordinate of padded pixels: distance^2 to any real pixel >= _BIG
_KP = 8               # zero-padded coordinate rows (MXU-friendly contraction width)


def _vmem_limit_bytes():
    """Per-generation VMEM budget (conservative fallback = v7x 64 MiB/TC)."""
    cap = 0
    try:
        info = pltpu.get_tpu_info()
        cap = int(getattr(info, "vmem_capacity_bytes", 0) or 0)
    except Exception:
        cap = 0
    if cap <= 0:
        cap = 64 * 1024 * 1024
    # leave headroom; never ask for more than ~112 MiB even on 128 MiB parts
    return max(32 * 1024 * 1024, min(cap * 3 // 4, 112 * 1024 * 1024))


def _pick_tiles(n_pad, vmem_limit):
    """Pick (TI, TJ): TI multiple of 128, TJ multiple of 8, both dividing n_pad,
    sized so ~6 live (TJ, TI) f32 temporaries stay within half the VMEM budget."""
    max_elems = max((vmem_limit // 2) // (6 * 4), 8 * 128)
    ti = 128
    for cand in range(min(2048, n_pad), 0, -128):
        if n_pad % cand == 0:
            ti = cand
            break
    tj_cap = max(8, min(1024, max_elems // ti, n_pad))
    tj_cap -= tj_cap % 8
    tj = 8
    for cand in range(max(tj_cap, 8), 0, -8):
        if n_pad % cand == 0:
            tj = cand
            break
    return ti, tj


# ----------------------------------------------------------------------------
# Fused kernel: per (batch, i-tile, j-tile) grid step
#   - rebuild squared distances d2[j, i] for this tile pair (cross term on MXU)
#   - update running XOR-masked mins for the pred-mask and target-mask fields
#   - at the last j-tile: emit the per-pixel dt_field for this (b, i-tile)
# ----------------------------------------------------------------------------
def _fused_kernel(pred_row_ref, targ_row_ref, mask_col_ref, crd_row_ref,
                  crd_col_ref, out_ref, minp_ref, mint_ref, *, alpha, precision):
    j = pl.program_id(2)
    n_j = pl.num_programs(2)

    @pl.when(j == 0)
    def _():
        minp_ref[...] = jnp.full(minp_ref.shape, _BIG, jnp.float32)
        mint_ref[...] = jnp.full(mint_ref.shape, _BIG, jnp.float32)

    kp = crd_row_ref.shape[0] - 1          # coordinate rows; squared norms in row kp

    crow = crd_row_ref[...]                # (kp+1, TI): rows 0..kp-1 = coords, row kp = |c_i|^2
    ccol = crd_col_ref[...]                # (TJ, kp+1): cols 0..kp-1 = -2*coords, col kp = |c_j|^2

    # Pairwise squared distances; cross term on the MXU (VALU only does 2 adds).
    cross = jnp.dot(ccol[:, :kp], crow[:kp, :],
                    preferred_element_type=jnp.float32, precision=precision)
    d2 = (cross + ccol[:, kp:kp + 1]) + crow[kp:kp + 1, :]        # (TJ, TI)

    # Binary masks: row side thresholded in-kernel (raw values also feed the
    # error term), column side pre-thresholded on the host (0/1 floats).
    pm_i = pred_row_ref[0] > 0.5           # (1, TI) bool
    tm_i = targ_row_ref[0] > 0.5
    mc = mask_col_ref[0]                   # (TJ, 2)
    pm_j = mc[:, 0:1] > 0.5                # (TJ, 1) bool
    tm_j = mc[:, 1:2] > 0.5

    # Opposite-class predicate via boolean XOR; one masked min per field
    # (== edt(fg) + edt(bg) of the reference).
    opp_p = jnp.logical_xor(pm_j, pm_i)    # (TJ, TI)
    opp_t = jnp.logical_xor(tm_j, tm_i)
    pd2 = jnp.where(opp_p, d2, _BIG)
    td2 = jnp.where(opp_t, d2, _BIG)
    minp_ref[...] = jnp.minimum(minp_ref[...], jnp.min(pd2, axis=0, keepdims=True))
    mint_ref[...] = jnp.minimum(mint_ref[...], jnp.min(td2, axis=0, keepdims=True))

    # Epilogue: per-pixel dt_field for this (batch, i-tile).
    @pl.when(j == n_j - 1)
    def _():
        pred = pred_row_ref[0]             # (1, TI) raw values
        targ = targ_row_ref[0]
        p_min = minp_ref[...]              # dt^2 (or >= _BIG if no opposite-class pixel)
        t_min = mint_ref[...]
        # No opposite-class pixel (all-fg / all-bg image) -> field 0; matches
        # the reference's "skip if no fg" branch.
        # TODO(synk): scipy's degenerate edt of an all-foreground image is not
        # reproduced here (the reference's behavior there is ill-defined).
        p_valid = p_min < (_BIG * 0.5)
        t_valid = t_min < (_BIG * 0.5)
        if alpha == 2.0:
            p_pow = jnp.where(p_valid, p_min, 0.0)   # dt^2 directly, no sqrt
            t_pow = jnp.where(t_valid, t_min, 0.0)
        else:
            p_pow = jnp.where(p_valid, jnp.sqrt(p_min), 0.0) ** alpha
            t_pow = jnp.where(t_valid, jnp.sqrt(t_min), 0.0) ** alpha
        err = (pred - targ) ** 2
        out_ref[0] = err * (p_pow + t_pow)


# ----------------------------------------------------------------------------
# HausdorffDTLoss forward (2D: (B,1,H,W), 3D: (B,1,X,Y,Z))
# ----------------------------------------------------------------------------
def hausdorff_dt_loss(pred, target, alpha=2.0):
    assert pred.ndim in (4, 5), "Only 2D (B,1,H,W) and 3D (B,1,X,Y,Z) supported"
    assert pred.shape == target.shape
    B = int(pred.shape[0])
    assert pred.shape[1] == 1, "Single (binary) channel expected"
    spatial = tuple(int(s) for s in pred.shape[2:])
    K = len(spatial)
    assert K <= _KP
    N = int(np.prod(spatial))
    # f32 squared distances are exact only while they stay below 2^24.
    assert sum((s - 1) ** 2 for s in spatial) < 2 ** 24, \
        "spatial extents too large for exact f32 squared distances"

    n_pad = ((N + 127) // 128) * 128
    vmem_limit = _vmem_limit_bytes()
    ti, tj = _pick_tiles(n_pad, vmem_limit)
    n_i_tiles = n_pad // ti
    n_j_tiles = n_pad // tj

    # ---- packed coordinate tables (static, shared across batch) -------------
    grids = np.meshgrid(*[np.arange(s, dtype=np.float32) for s in spatial],
                        indexing="ij")
    coords = np.stack([g.ravel() for g in grids], axis=0)          # (K, N)

    row_pack = np.zeros((_KP + 1, n_pad), np.float32)
    row_pack[:K, :N] = coords
    row_pack[0, N:] = _PAD_COORD            # padded pixels live very far away
    row_pack[_KP, :] = (row_pack[:_KP, :] ** 2).sum(axis=0)        # |c_i|^2

    col_pack = np.zeros((n_pad, _KP + 1), np.float32)
    col_pack[:, :_KP] = -2.0 * row_pack[:_KP, :].T                 # -2 * coords (MXU cross term)
    col_pack[:, _KP] = row_pack[_KP, :]                            # |c_j|^2

    crd_row = jnp.asarray(row_pack)                                # (KP+1, n_pad)
    crd_col = jnp.asarray(col_pack)                                # (n_pad, KP+1)

    # ---- data: lane-major raw rows + column-layout thresholded masks --------
    pred_row = pred.reshape(B, 1, N).astype(jnp.float32)
    targ_row = target.reshape(B, 1, N).astype(jnp.float32)
    pm = (pred_row[:, 0, :] > 0.5).astype(jnp.float32)
    tm = (targ_row[:, 0, :] > 0.5).astype(jnp.float32)
    mask_col = jnp.stack([pm, tm], axis=-1)                        # (B, N, 2)
    if n_pad != N:
        zpad = n_pad - N
        pred_row = jnp.pad(pred_row, ((0, 0), (0, 0), (0, zpad)))  # err == 0 on pads
        targ_row = jnp.pad(targ_row, ((0, 0), (0, 0), (0, zpad)))
        mask_col = jnp.pad(mask_col, ((0, 0), (0, zpad), (0, 0)))

    # MXU bf16 inputs represent integer coordinates exactly only up to 256;
    # request a high-precision multi-pass matmul for larger images.
    precision = (jax.lax.Precision.HIGHEST if max(spatial) > 256
                 else jax.lax.Precision.DEFAULT)

    kernel = functools.partial(_fused_kernel, alpha=float(alpha),
                               precision=precision)

    cost = pl.CostEstimate(
        flops=int(B * n_pad * n_pad * (2 * _KP + 14)),
        transcendentals=0,
        bytes_accessed=int(4 * (4 * B * n_pad + 2 * (_KP + 1) * n_pad)),
    )

    dt_field = pl.pallas_call(
        kernel,
        out_shape=jax.ShapeDtypeStruct((B, 1, n_pad), jnp.float32),
        grid_spec=pltpu.PrefetchScalarGridSpec(
            num_scalar_prefetch=0,
            grid=(B, n_i_tiles, n_j_tiles),
            in_specs=[
                pl.BlockSpec((1, 1, ti), lambda b, i, j: (b, 0, i)),   # pred (raw, rows)
                pl.BlockSpec((1, 1, ti), lambda b, i, j: (b, 0, i)),   # target (raw, rows)
                pl.BlockSpec((1, tj, 2), lambda b, i, j: (b, j, 0)),   # col masks (pred, target)
                pl.BlockSpec((_KP + 1, ti), lambda b, i, j: (0, i)),   # coords + |c|^2 (rows)
                pl.BlockSpec((tj, _KP + 1), lambda b, i, j: (j, 0)),   # -2*coords + |c|^2 (cols)
            ],
            out_specs=pl.BlockSpec((1, 1, ti), lambda b, i, j: (b, 0, i)),
            scratch_shapes=[pltpu.VMEM((1, ti), jnp.float32),   # running min (pred field)
                            pltpu.VMEM((1, ti), jnp.float32)],  # running min (target field)
        ),
        compiler_params=pltpu.CompilerParams(
            dimension_semantics=("parallel", "parallel", "arbitrary"),
            vmem_limit_bytes=int(vmem_limit),
        ),
        cost_estimate=cost,
    )(pred_row, targ_row, mask_col, crd_row, crd_col)

    # Mean over real (unpadded) pixels; padded lanes contribute exactly 0.
    return jnp.sum(dt_field) * (1.0 / float(B * N))


# ----------------------------------------------------------------------------
# Pure-numpy reference (brute force exact EDT) for verification
# ----------------------------------------------------------------------------
def _edt_np(mask):
    H, W = mask.shape
    ys, xs = np.meshgrid(np.arange(H), np.arange(W), indexing="ij")
    coords = np.stack([ys.ravel(), xs.ravel()], 1).astype(np.float64)
    m = mask.ravel()
    out = np.zeros(H * W, dtype=np.float64)
    bg = coords[~m]
    if bg.shape[0] == 0:
        return out.reshape(H, W)
    for i in np.nonzero(m)[0]:
        out[i] = np.sqrt(((coords[i] - bg) ** 2).sum(1)).min()
    return out.reshape(H, W)


def _ref_loss(pred, target, alpha=2.0):
    def df(img):
        field = np.zeros(img.shape, dtype=np.float64)
        for b in range(img.shape[0]):
            fg = img[b, 0] > 0.5
            if fg.any():
                field[b, 0] = _edt_np(fg) + _edt_np(~fg)
        return field

    pred_dt = df(pred)
    target_dt = df(target)
    pred_error = (pred.astype(np.float64) - target.astype(np.float64)) ** 2
    distance = pred_dt ** alpha + target_dt ** alpha
    return float((pred_error * distance).mean())


if __name__ == "__main__":
    key = jax.random.PRNGKey(0)
    k1, k2 = jax.random.split(key)
    B, C, H, W = 2, 1, 16, 16
    pred = jax.random.uniform(k1, (B, C, H, W), dtype=jnp.float32)
    target = (jax.random.uniform(k2, (B, C, H, W)) > 0.5).astype(jnp.float32)

    loss = hausdorff_dt_loss(pred, target, alpha=2.0)
    loss = jax.block_until_ready(loss)

    ref = _ref_loss(np.asarray(pred), np.asarray(target), alpha=2.0)
    assert np.allclose(float(loss), ref, rtol=1e-3, atol=1e-5), (float(loss), ref)
    print("KERNEL_OK")
</pallas_src>

<mosaic_0001>
module attributes {stable_mosaic.version = 11 : i64} {
  func.func @_fused_kernel(%arg0: i32, %arg1: i32, %arg2: i32, %arg3: memref<1x1x256xf32, #tpu.memory_space<vmem>>, %arg4: memref<1x1x256xf32, #tpu.memory_space<vmem>>, %arg5: memref<1x256x2xf32, #tpu.memory_space<vmem>>, %arg6: memref<9x256xf32, #tpu.memory_space<vmem>>, %arg7: memref<256x9xf32, #tpu.memory_space<vmem>>, %arg8: memref<1x1x256xf32, #tpu.memory_space<vmem>>, %arg9: memref<1x256xf32, #tpu.memory_space<vmem>>, %arg10: memref<1x256xf32, #tpu.memory_space<vmem>>) attributes {dimension_semantics = [#tpu.dimension_semantics<parallel>, #tpu.dimension_semantics<parallel>, #tpu.dimension_semantics<arbitrary>], iteration_bounds = array<i64: 2, 1, 1>, scalar_prefetch = 0 : i64, scratch_operands = 2 : i64, tpu.core_type = #tpu.core_type<tc>, window_params = [{transform_indices = @transform_0, window_bounds = array<i64: 1, 1, 256>}, {transform_indices = @transform_1, window_bounds = array<i64: 1, 1, 256>}, {transform_indices = @transform_2, window_bounds = array<i64: 1, 256, 2>}, {transform_indices = @transform_3, window_bounds = array<i64: 9, 256>}, {transform_indices = @transform_4, window_bounds = array<i64: 256, 9>}, {transform_indices = @transform_5, window_bounds = array<i64: 1, 1, 256>}]} {
    %c0_i32 = arith.constant 0 : i32
    %0 = arith.cmpi eq, %arg2, %c0_i32 : i32
    %1 = arith.extui %0 : i1 to i32
    %c0_i32_0 = arith.constant 0 : i32
    %2 = arith.cmpi ne, %1, %c0_i32_0 : i32
    scf.if %2 {
      %cst_31 = arith.constant 1.000000e+09 : f32
      %53 = vector.broadcast %cst_31 : f32 to vector<1x256xf32>
      %c0_32 = arith.constant 0 : index
      %c0_33 = arith.constant 0 : index
      %54 = vector.load %arg9[%c0_32, %c0_33] : memref<1x256xf32, #tpu.memory_space<vmem>>, vector<1x256xf32>
      tpu.vector_store %arg9[%c0_32, %c0_33], %53 {strides = array<i32>} : memref<1x256xf32, #tpu.memory_space<vmem>>, vector<1x256xf32>,
      %cst_34 = arith.constant 1.000000e+09 : f32
      %55 = vector.broadcast %cst_34 : f32 to vector<1x256xf32>
      %c0_35 = arith.constant 0 : index
      %c0_36 = arith.constant 0 : index
      %56 = vector.load %arg10[%c0_35, %c0_36] : memref<1x256xf32, #tpu.memory_space<vmem>>, vector<1x256xf32>
      tpu.vector_store %arg10[%c0_35, %c0_36], %55 {strides = array<i32>} : memref<1x256xf32, #tpu.memory_space<vmem>>, vector<1x256xf32>,
    } else {
    }
    %c0 = arith.constant 0 : index
    %c0_1 = arith.constant 0 : index
    %3 = vector.load %arg6[%c0, %c0_1] : memref<9x256xf32, #tpu.memory_space<vmem>>, vector<9x256xf32>
    %c0_2 = arith.constant 0 : index
    %c0_3 = arith.constant 0 : index
    %4 = vector.load %arg7[%c0_2, %c0_3] : memref<256x9xf32, #tpu.memory_space<vmem>>, vector<256x9xf32>
    %5 = vector.extract_strided_slice %4 {offsets = [0, 0], sizes = [256, 8], strides = [1, 1]} : vector<256x9xf32> to vector<256x8xf32>
    %6 = vector.extract_strided_slice %3 {offsets = [0, 0], sizes = [8, 256], strides = [1, 1]} : vector<9x256xf32> to vector<8x256xf32>
    %cst = arith.constant dense<0.000000e+00> : vector<256x256xf32>
    %7 = tpu.matmul %5, %6, %cst {dimension_numbers = #tpu.dot_dimension_numbers<[1], [0], [0], [1], [0, 0, 1, 1], [], []>} : vector<256x8xf32>, vector<8x256xf32>, vector<256x256xf32> -> vector<256x256xf32>
    %8 = vector.extract_strided_slice %4 {offsets = [0, 8], sizes = [256, 1], strides = [1, 1]} : vector<256x9xf32> to vector<256x1xf32>
    %9 = vector.broadcast %8 : vector<256x1xf32> to vector<256x256xf32>
    %10 = arith.addf %7, %9 : vector<256x256xf32>
    %11 = vector.extract_strided_slice %3 {offsets = [8, 0], sizes = [1, 256], strides = [1, 1]} : vector<9x256xf32> to vector<1x256xf32>
    %12 = vector.broadcast %11 : vector<1x256xf32> to vector<256x256xf32>
    %13 = arith.addf %10, %12 : vector<256x256xf32>
    %c0_4 = arith.constant 0 : index
    %c0_5 = arith.constant 0 : index
    %c0_6 = arith.constant 0 : index
    %14 = vector.load %arg3[%c0_4, %c0_5, %c0_6] : memref<1x1x256xf32, #tpu.memory_space<vmem>>, vector<1x1x256xf32>
    %15 = vector.shape_cast %14 : vector<1x1x256xf32> to vector<1x256xf32>
    %cst_7 = arith.constant 5.000000e-01 : f32
    %16 = vector.broadcast %cst_7 : f32 to vector<1x256xf32>
    %17 = arith.cmpf ogt, %15, %16 : vector<1x256xf32>
    %c0_8 = arith.constant 0 : index
    %c0_9 = arith.constant 0 : index
    %c0_10 = arith.constant 0 : index
    %18 = vector.load %arg4[%c0_8, %c0_9, %c0_10] : memref<1x1x256xf32, #tpu.memory_space<vmem>>, vector<1x1x256xf32>
    %19 = vector.shape_cast %18 : vector<1x1x256xf32> to vector<1x256xf32>
    %cst_11 = arith.constant 5.000000e-01 : f32
    %20 = vector.broadcast %cst_11 : f32 to vector<1x256xf32>
    %21 = arith.cmpf ogt, %19, %20 : vector<1x256xf32>
    %c0_12 = arith.constant 0 : index
    %c0_13 = arith.constant 0 : index
    %c0_14 = arith.constant 0 : index
    %22 = vector.load %arg5[%c0_12, %c0_13, %c0_14] : memref<1x256x2xf32, #tpu.memory_space<vmem>>, vector<1x256x2xf32>
    %23 = vector.shape_cast %22 : vector<1x256x2xf32> to vector<256x2xf32>
    %24 = vector.extract_strided_slice %23 {offsets = [0, 0], sizes = [256, 1], strides = [1, 1]} : vector<256x2xf32> to vector<256x1xf32>
    %cst_15 = arith.constant 5.000000e-01 : f32
    %25 = vector.broadcast %cst_15 : f32 to vector<256x1xf32>
    %26 = arith.cmpf ogt, %24, %25 : vector<256x1xf32>
    %27 = vector.extract_strided_slice %23 {offsets = [0, 1], sizes = [256, 1], strides = [1, 1]} : vector<256x2xf32> to vector<256x1xf32>
    %cst_16 = arith.constant 5.000000e-01 : f32
    %28 = vector.broadcast %cst_16 : f32 to vector<256x1xf32>
    %29 = arith.cmpf ogt, %27, %28 : vector<256x1xf32>
    %30 = vector.broadcast %26 : vector<256x1xi1> to vector<256x256xi1>
    %31 = vector.broadcast %17 : vector<1x256xi1> to vector<256x256xi1>
    %32 = arith.xori %30, %31 : vector<256x256xi1>
    %33 = vector.broadcast %29 : vector<256x1xi1> to vector<256x256xi1>
    %34 = vector.broadcast %21 : vector<1x256xi1> to vector<256x256xi1>
    %35 = arith.xori %33, %34 : vector<256x256xi1>
    %cst_17 = arith.constant 1.000000e+09 : f32
    %36 = vector.broadcast %cst_17 : f32 to vector<256x256xf32>
    %37 = arith.select %32, %13, %36 : vector<256x256xi1>, vector<256x256xf32>
    %cst_18 = arith.constant 1.000000e+09 : f32
    %38 = vector.broadcast %cst_18 : f32 to vector<256x256xf32>
    %39 = arith.select %35, %13, %38 : vector<256x256xi1>, vector<256x256xf32>
    %c0_19 = arith.constant 0 : index
    %c0_20 = arith.constant 0 : index
    %40 = vector.load %arg9[%c0_19, %c0_20] : memref<1x256xf32, #tpu.memory_space<vmem>>, vector<1x256xf32>
    %cst_21 = arith.constant dense<0x7F800000> : vector<256xf32>
    %41 = vector.multi_reduction <minimumf>, %37, %cst_21 [0] : vector<256x256xf32> to vector<256xf32>
    %42 = vector.shape_cast %41 : vector<256xf32> to vector<1x256xf32>
    %43 = arith.minimumf %40, %42 : vector<1x256xf32>
    %c0_22 = arith.constant 0 : index
    %c0_23 = arith.constant 0 : index
    %44 = vector.load %arg9[%c0_22, %c0_23] : memref<1x256xf32, #tpu.memory_space<vmem>>, vector<1x256xf32>
    tpu.vector_store %arg9[%c0_22, %c0_23], %43 {strides = array<i32>} : memref<1x256xf32, #tpu.memory_space<vmem>>, vector<1x256xf32>,
    %c0_24 = arith.constant 0 : index
    %c0_25 = arith.constant 0 : index
    %45 = vector.load %arg10[%c0_24, %c0_25] : memref<1x256xf32, #tpu.memory_space<vmem>>, vector<1x256xf32>
    %cst_26 = arith.constant dense<0x7F800000> : vector<256xf32>
    %46 = vector.multi_reduction <minimumf>, %39, %cst_26 [0] : vector<256x256xf32> to vector<256xf32>
    %47 = vector.shape_cast %46 : vector<256xf32> to vector<1x256xf32>
    %48 = arith.minimumf %45, %47 : vector<1x256xf32>
    %c0_27 = arith.constant 0 : index
    %c0_28 = arith.constant 0 : index
    %49 = vector.load %arg10[%c0_27, %c0_28] : memref<1x256xf32, #tpu.memory_space<vmem>>, vector<1x256xf32>
    tpu.vector_store %arg10[%c0_27, %c0_28], %48 {strides = array<i32>} : memref<1x256xf32, #tpu.memory_space<vmem>>, vector<1x256xf32>,
    %c0_i32_29 = arith.constant 0 : i32
    %50 = arith.cmpi eq, %arg2, %c0_i32_29 : i32
    %51 = arith.extui %50 : i1 to i32
    %c0_i32_30 = arith.constant 0 : i32
    %52 = arith.cmpi ne, %51, %c0_i32_30 : i32
    scf.if %52 {
      %c0_31 = arith.constant 0 : index
      %c0_32 = arith.constant 0 : index
      %c0_33 = arith.constant 0 : index
      %53 = vector.load %arg3[%c0_31, %c0_32, %c0_33] : memref<1x1x256xf32, #tpu.memory_space<vmem>>, vector<1x1x256xf32>
      %54 = vector.shape_cast %53 : vector<1x1x256xf32> to vector<1x256xf32>
      %c0_34 = arith.constant 0 : index
      %c0_35 = arith.constant 0 : index
      %c0_36 = arith.constant 0 : index
      %55 = vector.load %arg4[%c0_34, %c0_35, %c0_36] : memref<1x1x256xf32, #tpu.memory_space<vmem>>, vector<1x1x256xf32>
      %56 = vector.shape_cast %55 : vector<1x1x256xf32> to vector<1x256xf32>
      %c0_37 = arith.constant 0 : index
      %c0_38 = arith.constant 0 : index
      %57 = vector.load %arg9[%c0_37, %c0_38] : memref<1x256xf32, #tpu.memory_space<vmem>>, vector<1x256xf32>
      %c0_39 = arith.constant 0 : index
      %c0_40 = arith.constant 0 : index
      %58 = vector.load %arg10[%c0_39, %c0_40] : memref<1x256xf32, #tpu.memory_space<vmem>>, vector<1x256xf32>
      %cst_41 = arith.constant 5.000000e+08 : f32
      %59 = vector.broadcast %cst_41 : f32 to vector<1x256xf32>
      %60 = arith.cmpf olt, %57, %59 : vector<1x256xf32>
      %cst_42 = arith.constant 5.000000e+08 : f32
      %61 = vector.broadcast %cst_42 : f32 to vector<1x256xf32>
      %62 = arith.cmpf olt, %58, %61 : vector<1x256xf32>
      %cst_43 = arith.constant 0.000000e+00 : f32
      %63 = vector.broadcast %cst_43 : f32 to vector<1x256xf32>
      %64 = arith.select %60, %57, %63 : vector<1x256xi1>, vector<1x256xf32>
      %cst_44 = arith.constant 0.000000e+00 : f32
      %65 = vector.broadcast %cst_44 : f32 to vector<1x256xf32>
      %66 = arith.select %62, %58, %65 : vector<1x256xi1>, vector<1x256xf32>
      %67 = arith.subf %54, %56 : vector<1x256xf32>
      %68 = arith.mulf %67, %67 : vector<1x256xf32>
      %69 = arith.addf %64, %66 : vector<1x256xf32>
      %70 = arith.mulf %68, %69 : vector<1x256xf32>
      %c0_45 = arith.constant 0 : index
      %c0_46 = arith.constant 0 : index
      %c0_47 = arith.constant 0 : index
      %71 = vector.load %arg8[%c0_45, %c0_46, %c0_47] : memref<1x1x256xf32, #tpu.memory_space<vmem>>, vector<1x1x256xf32>
      %72 = vector.shape_cast %71 : vector<1x1x256xf32> to vector<1x256xf32>
      %73 = vector.shape_cast %70 : vector<1x256xf32> to vector<1x1x256xf32>
      tpu.vector_store %arg8[%c0_45, %c0_46, %c0_47], %73 {strides = array<i32>} : memref<1x1x256xf32, #tpu.memory_space<vmem>>, vector<1x1x256xf32>,
    } else {
    }
    return
  }
  func.func @transform_0(%arg0: i32, %arg1: i32, %arg2: i32) -> (i32, i32, i32) {
    %c0_i32 = arith.constant 0 : i32
    %c0_i32_0 = arith.constant 0 : i32
    return %arg0, %c0_i32, %arg1 : i32, i32, i32
  }
  func.func @transform_1(%arg0: i32, %arg1: i32, %arg2: i32) -> (i32, i32, i32) {
    %c0_i32 = arith.constant 0 : i32
    %c0_i32_0 = arith.constant 0 : i32
    return %arg0, %c0_i32, %arg1 : i32, i32, i32
  }
  func.func @transform_2(%arg0: i32, %arg1: i32, %arg2: i32) -> (i32, i32, i32) {
    %c0_i32 = arith.constant 0 : i32
    %c0_i32_0 = arith.constant 0 : i32
    return %arg0, %arg2, %c0_i32 : i32, i32, i32
  }
  func.func @transform_3(%arg0: i32, %arg1: i32, %arg2: i32) -> (i32, i32) {
    %c0_i32 = arith.constant 0 : i32
    %c0_i32_0 = arith.constant 0 : i32
    return %c0_i32, %arg1 : i32, i32
  }
  func.func @transform_4(%arg0: i32, %arg1: i32, %arg2: i32) -> (i32, i32) {
    %c0_i32 = arith.constant 0 : i32
    %c0_i32_0 = arith.constant 0 : i32
    return %arg2, %c0_i32 : i32, i32
  }
  func.func @transform_5(%arg0: i32, %arg1: i32, %arg2: i32) -> (i32, i32, i32) {
    %c0_i32 = arith.constant 0 : i32
    %c0_i32_0 = arith.constant 0 : i32
    return %arg0, %c0_i32, %arg1 : i32, i32, i32
  }
}

</mosaic_0001>

<bundles_post_ra>
// kernel: tpu_custom_call.1
= control target key start
LH: loop header
LB: loop body
LE: loop exit
PB: predicated region body
PF: predicated region fallthrough
CT: control target
= control target key end

     0   :  { %10 = vsyncpa [#allocation5], 0  ;;  %s4134_s0 = inlined_call_operand.vmem [shape: f32[2,1,256], index: 0, kind: input, shape index: {}]   ;;  %s4135_s1 = inlined_call_operand.vmem [shape: f32[2,1,256], index: 1, kind: input, shape index: {}]   ;;  %s4136_s2 = inlined_call_operand.vmem [shape: f32[2,256,2], index: 2, kind: input, shape index: {}]   ;;  %s4137_s3 = inlined_call_operand.vmem [shape: f32[9,256], index: 3, kind: input, shape index: {}]   ;;  %s4138_s4 = inlined_call_operand.vmem [shape: f32[256,9], index: 4, kind: input, shape index: {}]   ;;  %s4139_s5 = inlined_call_operand.hbm [shape: f32[2,1,256], index: 5, kind: output, shape index: {}]  }
   0x1   :  { %12 = vsyncpa [#allocation5 + $0x1], 0  ;;  %s2214_s18 = smov 0   ;;  %s2216_s19 = smov 0  }
   0x2   :  { %s2218_s20 = smov 0   ;;  %s2220_s21 = smov 0  }
   0x3   :  { %s2222_s22 = smov 0   ;;  %s2224_s23 = smov 0  }
   0x4 LB: > { %s1971_s24 = sadd.s32 4294967295, %s2175_s23   ;;  %s1972_s25 = sadd.s32 4294967294, %s2175_s23   ;;  %s2175_s23 = sphi %s2224_s23, %s18_s23   ;;  %s2171_s22 = sphi %s2222_s22, %s4403_s22   ;;  %s2167_s21 = sphi %s2220_s21, %s4402_s21   ;;  %s2163_s20 = sphi %s2218_s20, %s4401_s20   ;;  %s2159_s19 = sphi %s2216_s19, %s4400_s19   ;;  %s2155_s18 = sphi %s2214_s18, %s4399_s18  }
   0x5   : > { %s37_s26 = sadd.s32 1, %s2171_s22  ;;  %s182_s27 = sadd.s32 1, %s2163_s20 }
   0x6   : > { %p39_p0 = scmp.ge.s32.totalorder %s37_s26, 2  ;;  %p192_p1 = scmp.ne.s32.totalorder %s2163_s20, %s2159_s19 }
   0x7   : > { %p193_p2 = scmp.eq.s32.totalorder %s1971_s24, 1  ;;  %p198_p3 = scmp.ne.s32.totalorder %s2159_s19, %s2155_s18 }
   0x8   : > { %s4405_s26 = smov (%p39_p0, %s37_s26), 0  ;;  %p199_p5 = scmp.eq.s32.totalorder %s1972_s25, 1 }
   0x9   : > { %p2254_p4 = por %p193_p2, %p192_p1  ;;  %s177_s29 = ssub.s32 %s2171_s22, %s4405_s26 }
   0xa   : > { %p1977_p6 = scmp.ge.s32.totalorder %s2175_s23, 1  ;;  %p180_p7 = scmp.eq.s32.totalorder %s177_s29, 0 }
   0xb   : > { %p2261_p8 = por %p199_p5, %p198_p3  ;;  %p272_p9 = scmp.lt.s32.totalorder %s2175_s23, 3 }
   0xc   : > { %s2267_s6 = scalar_select %p180_p7, %s2163_s20, %s182_s27  }
   0xd   : > { %p273_p10 = pnand %p1977_p6, %p272_p9 }
   0xf   : > { %276 = sbr.rel (%p273_p10) target bundleno = 432 (0x1b0), region = 40 }
  0x16   : > { %v382_v0 = vld [vmem:[%s4137_s3 + $0x8] sm:$0xff]  ;;  %v2177_v1 = vmov 8   ;;  %v387_v2 = vld [vmem:[%s4138_s4 + $0x10] sm:$0xff]  ;;  %v385_v3 = vld [vmem:[%s4138_s4] sm:$0xff]  ;;  %v2178_v5 = vmov 0.0   ;;  %vm577_vm0 = vcmask 64512  }
  0x17   : > { %2088 = vset.pattern.permute.xlu1 %v2177_v1  ;;  %2087 = vset.pattern.permute.xlu0 %v2177_v1  ;;  %v381_v4 = vld [vmem:[%s4137_s3] sm:$0xff]  ;;  %v388_v7 = vld [vmem:[%s4138_s4 + $0x18] sm:$0xff]  ;;  %v386_v8 = vld [vmem:[%s4138_s4 + $0x8] sm:$0xff]  ;;  %p331_p11 = scmp.lt.s32.totalorder %s2167_s21, 1  ;;  %v4141_v40 = vmov 0   ;;  %s2023_s8 = sshll.u32 %s2167_s21, 5 }
  0x18   : > { %642 = vmatprep.subr.mxu0 %v382_v0  ;;  %2024 = vmatprep.subr.mxu1 %v382_v0  ;;  %v2286_v6 = vld [vmem:[%s4138_s4 + $0x80] sm:$0xff]  ;;  %v402_v9 = vld [vmem:[%s4138_s4 + $0x88] sm:$0xff]  ;;  %v403_v12 = vld [vmem:[%s4138_s4 + $0x90] sm:$0xff] }
  0x19   : > { %706 = vmatprep.mubr.f32.mxu0 %v2178_v5  ;;  %802 = vmatprep.mubr.f32.mxu1 %v2178_v5  ;;  %v390_v10 = vld [vmem:[%s4138_s4 + $0x28] sm:$0xff]  ;;  %v389_v11 = vld [vmem:[%s4138_s4 + $0x20] sm:$0xff]  ;;  %v392_v13 = vld [vmem:[%s4138_s4 + $0x38] sm:$0xff]  ;;  %s2422_s7 = scalar_select %p331_p11, %s2167_s21, 1 }
  0x1a   : > { %429 = vperm.xlu1 %2088, %v387_v2   ;;  %419 = vperm.xlu0 %2087, %v385_v3   ;;  %v391_v14 = vld [vmem:[%s4138_s4 + $0x30] sm:$0xff]  ;;  %v404_v15 = vld [vmem:[%s4138_s4 + $0x98] sm:$0xff]  ;;  %v394_v16 = vld [vmem:[%s4138_s4 + $0x48] sm:$0xff]  ;;  %s2183_s21 = smov [#allocation4]  }
  0x1b   : > { %643 = vmatpush1.msra.mxu0 %v381_v4  ;;  %2025 = vmatpush1.msra.mxu1 %v381_v4  ;;  %v393_v17 = vld [vmem:[%s4138_s4 + $0x40] sm:$0xff]  ;;  %v396_v19 = vld [vmem:[%s4138_s4 + $0x58] sm:$0xff]  ;;  %v395_v20 = vld [vmem:[%s4138_s4 + $0x50] sm:$0xff]  ;;  %s2022_s10 = sshll.u32 %s2422_s7, 8  ;;  %s1979_s27 = sshll.u32 %s2422_s7, 1 }
  0x1c   : > { %1983 = vmatmul.mubr.msk.f32.vlgmr.msra.gmra.mrb[0].mxu0 %vm577_vm0, %v385_v3  ;;  %1999 = vmatmul.mubr.msk.f32.vlgmr.msra.gmra.mrb[0].mxu1 %vm577_vm0, %v2286_v6  ;;  %v405_v18 = vld [vmem:[%s4138_s4 + $0xa0] sm:$0xff]  ;;  %v406_v21 = vld [vmem:[%s4138_s4 + $0xa8] sm:$0xff]  ;;  %v407_v24 = vld [vmem:[%s4138_s4 + $0xb0] sm:$0xff]  ;;  %s2440_s15 = scalar_lea.vmem %s4136_s2, %s2022_s10  ;;  %s2729_s9 = scalar_lea.vmem %s4134_s0, %s1979_s27 }
  0x1d   : > { %712 = vmatprep.mubr.f32.mxu0 %v2178_v5  ;;  %808 = vmatprep.mubr.f32.mxu1 %v2178_v5  ;;  %v2357_v22 = vld [vmem:[%s4138_s4 + $0x68] sm:$0xff]  ;;  %v397_v23 = vld [vmem:[%s4138_s4 + $0x60] sm:$0xff]  ;;  %v2373_v25 = vld [vmem:[%s4138_s4 + $0x78] sm:$0xff]  ;;  %s2753_s11 = scalar_lea.vmem %s4135_s1, %s1979_s27  ;;  %s327_s27 = sand.u32 1, %s2159_s19  }
  0x1e   : > { %434 = vperm.xlu1 %2088, %v388_v7   ;;  %424 = vperm.xlu0 %2087, %v386_v8   ;;  %v2378_v26 = vld [vmem:[%s4138_s4 + $0x70] sm:$0xff]  ;;  %v408_v27 = vld [vmem:[%s4138_s4 + $0xb8] sm:$0xff]  ;;  %v409_v28 = vld [vmem:[%s4138_s4 + $0xc0] sm:$0xff]  ;;  %s1978_s29 = sshll.u32 %s327_s27, 1 }
  0x1f   : > { %v410_v29 = vld [vmem:[%s4138_s4 + $0xc8] sm:$0xff]  ;;  %v411_v30 = vld [vmem:[%s4138_s4 + $0xd0] sm:$0xff]  ;;  %v412_v31 = vld [vmem:[%s4138_s4 + $0xd8] sm:$0xff]  ;;  %s329_s7 = scalar_lea.vmem [#allocation4], %s1978_s29 }
  0x20   : > { %1984 = vmatmul.mubr.msk.f32.gmra.mrb[2].mxu0 %vm577_vm0, %v386_v8  ;;  %2000 = vmatmul.mubr.msk.f32.gmra.mrb[2].mxu1 %vm577_vm0, %v402_v9  ;;  %v413_v32 = vld [vmem:[%s4138_s4 + $0xe0] sm:$0xff]  ;;  %v414_v33 = vld [vmem:[%s4138_s4 + $0xe8] sm:$0xff]  ;;  %v415_v34 = vld [vmem:[%s4138_s4 + $0xf0] sm:$0xff]  ;;  %s1832_s10 = sshll.u32 %s329_s7, 4  ;;  %s4087_s10 = int_to_ptr.vmem [resolvable:$true] %s1832_s10 }
  0x21   : > { %718 = vmatprep.mubr.f32.mxu0 %v2178_v5  ;;  %814 = vmatprep.mubr.f32.mxu1 %v2178_v5  ;;  %v976_v35 = vld [vmem:[%s2440_s15 + $0x8] sm:$0xff]  ;;  %v975_v36 = vld [vmem:[%s2440_s15] sm:$0xff]  ;;  %v416_v37 = vld [vmem:[%s4138_s4 + $0xf8] sm:$0xff]  ;;  %s2097_s14 = scalar_lea.vmem %s4087_s10, 32 }
  0x22   : > { %444 = vperm.xlu1 %2088, %v390_v10   ;;  %439 = vperm.xlu0 %2087, %v389_v11   ;;  %vm1008_vm1 = vcmp.gt.f32.partialorder %v976_v35, 0.5  ;;  %vm1007_vm2 = vcmp.gt.f32.partialorder %v975_v36, 0.5  ;;  %v977_v38 = vld [vmem:[%s2440_s15 + $0x10] sm:$0xff]  ;;  %v978_v39 = vld [vmem:[%s2440_s15 + $0x18] sm:$0xff]  ;;  %v979_v43 = vld [vmem:[%s2440_s15 + $0x20] sm:$0xff]  ;;  %v2180_v35 = vmov 1   ;;  %p2098_p12 = scmp.ne.s32.totalorder %s4087_s10, %s2097_s14 }
  0x23   : > { %v2466_v41 = vsel %vm1008_vm1, 1, %v4141_v40  ;;  %v2469_v42 = vsel %vm1007_vm2, 1, %v4141_v40  ;;  %vm1009_vm3 = vcmp.gt.f32.partialorder %v977_v38, 0.5  ;;  %vm1010_vm4 = vcmp.gt.f32.partialorder %v978_v39, 0.5  ;;  %v980_v44 = vld [vmem:[%s2440_s15 + $0x28] sm:$0xff]  ;;  %v981_v47 = vld [vmem:[%s2440_s15 + $0x30] sm:$0xff] }
  0x24   : > { %1985 = vmatmul.mubr.msk.f32.gmra.mrb[4].mxu0 %vm577_vm0, %v387_v2  ;;  %2001 = vmatmul.mubr.msk.f32.gmra.mrb[4].mxu1 %vm577_vm0, %v403_v12  ;;  %v2478_v45 = vsel %vm1009_vm3, 1, %v4141_v40  ;;  %v2481_v46 = vsel %vm1010_vm4, 1, %v4141_v40  ;;  %vm1011_vm5 = vcmp.gt.f32.partialorder %v979_v43, 0.5  ;;  %vm1012_vm6 = vcmp.gt.f32.partialorder %v980_v44, 0.5  ;;  %v982_v48 = vld [vmem:[%s2440_s15 + $0x38] sm:$0xff]  ;;  %v983_v51 = vld [vmem:[%s2440_s15 + $0x40] sm:$0xff]  ;;  %p2099_p13 = pnand %p2098_p12, %p2254_p4 }
  0x25   : > { %724 = vmatprep.mubr.f32.mxu0 %v2178_v5  ;;  %820 = vmatprep.mubr.f32.mxu1 %v2178_v5  ;;  %v2488_v49 = vsel %vm1011_vm5, 1, %v4141_v40  ;;  %v2491_v50 = vsel %vm1012_vm6, 1, %v4141_v40  ;;  %vm1013_vm7 = vcmp.gt.f32.partialorder %v981_v47, 0.5  ;;  %vm1014_vm8 = vcmp.gt.f32.partialorder %v982_v48, 0.5  ;;  %v984_v52 = vld [vmem:[%s2440_s15 + $0x48] sm:$0xff]  ;;  %v985_v55 = vld [vmem:[%s2440_s15 + $0x50] sm:$0xff] }
  0x26   : > { %454 = vperm.xlu1 %2088, %v392_v13   ;;  %449 = vperm.xlu0 %2087, %v391_v14   ;;  %v2498_v53 = vsel %vm1013_vm7, 1, %v4141_v40  ;;  %v2501_v54 = vsel %vm1014_vm8, 1, %v4141_v40  ;;  %vm1015_vm9 = vcmp.gt.f32.partialorder %v983_v51, 0.5  ;;  %vm1016_vm10 = vcmp.gt.f32.partialorder %v984_v52, 0.5  ;;  %v986_v56 = vld [vmem:[%s2440_s15 + $0x58] sm:$0xff]  ;;  %v987_v59 = vld [vmem:[%s2440_s15 + $0x60] sm:$0xff]  ;;  %p2100_p0 = pneg %p2099_p13 }
  0x27   : > { %v2508_v57 = vsel %vm1015_vm9, 1, %v4141_v40  ;;  %v2511_v58 = vsel %vm1016_vm10, 1, %v4141_v40  ;;  %vm1017_vm11 = vcmp.gt.f32.partialorder %v985_v55, 0.5  ;;  %vm1018_vm12 = vcmp.gt.f32.partialorder %v986_v56, 0.5  ;;  %v988_v60 = vld [vmem:[%s2440_s15 + $0x68] sm:$0xff]  ;;  %v989_v63 = vld [vmem:[%s2440_s15 + $0x70] sm:$0xff] }
  0x28   : > { %1986 = vmatmul.mubr.msk.f32.gmra.mrb[6].mxu0 %vm577_vm0, %v388_v7  ;;  %2002 = vmatmul.mubr.msk.f32.gmra.mrb[6].mxu1 %vm577_vm0, %v404_v15  ;;  %v2518_v61 = vsel %vm1017_vm11, 1, %v4141_v40  ;;  %v2521_v62 = vsel %vm1018_vm12, 1, %v4141_v40  ;;  %vm1019_vm13 = vcmp.gt.f32.partialorder %v987_v59, 0.5  ;;  %vm1020_vm14 = vcmp.gt.f32.partialorder %v988_v60, 0.5  ;;  %v990_v0 = vld [vmem:[%s2440_s15 + $0x78] sm:$0xff]  ;;  %v991_v3 = vld [vmem:[%s2440_s15 + $0x80] sm:$0xff] }
  0x29   : > { %730 = vmatprep.mubr.f32.mxu0 %v2178_v5  ;;  %826 = vmatprep.mubr.f32.mxu1 %v2178_v5  ;;  %v2528_v1 = vsel %vm1019_vm13, 1, %v4141_v40  ;;  %v2531_v2 = vsel %vm1020_vm14, 1, %v4141_v40  ;;  %vm1021_vm15 = vcmp.gt.f32.partialorder %v989_v63, 0.5  ;;  %v992_v4 = vld [vmem:[%s2440_s15 + $0x88] sm:$0xff]  ;;  %vm1023_vm1 = vcmp.gt.f32.partialorder %v991_v3, 0.5  ;;  %v993_v7 = vld [vmem:[%s2440_s15 + $0x90] sm:$0xff] }
  0x2a   : > { %464 = vperm.xlu1 %2088, %v394_v16   ;;  %459 = vperm.xlu0 %2087, %v393_v17   ;;  %vm1024_vm2 = vcmp.gt.f32.partialorder %v992_v4, 0.5  ;;  %v994_v8 = vld [vmem:[%s2440_s15 + $0x98] sm:$0xff]  ;;  %vm1025_vm3 = vcmp.gt.f32.partialorder %v993_v7, 0.5 }
  0x2b   : > { %vm1026_vm4 = vcmp.gt.f32.partialorder %v994_v8, 0.5 }
  0x2c   : > { %1987 = vmatmul.mubr.msk.f32.gmra.mrb[8].mxu0 %vm577_vm0, %v389_v11  ;;  %2003 = vmatmul.mubr.msk.f32.gmra.mrb[8].mxu1 %vm577_vm0, %v405_v18  ;;  %v995_v11 = vld [vmem:[%s2440_s15 + $0xa0] sm:$0xff] }
  0x2d   : > { %736 = vmatprep.mubr.f32.mxu0 %v2178_v5  ;;  %832 = vmatprep.mubr.f32.mxu1 %v2178_v5  ;;  %vm1027_vm5 = vcmp.gt.f32.partialorder %v995_v11, 0.5  ;;  %v4140_v11 = vlaneseq }
  0x2e   : > { %474 = vperm.xlu1 %2088, %v396_v19   ;;  %469 = vperm.xlu0 %2087, %v395_v20  }
  0x30   : > { %1988 = vmatmul.mubr.msk.f32.gmra.mrb[10].mxu0 %vm577_vm0, %v390_v10  ;;  %2004 = vmatmul.mubr.msk.f32.gmra.mrb[10].mxu1 %vm577_vm0, %v406_v21  ;;  %v2551_v10 = vsel %vm1024_vm2, 1, %v4141_v40 }
  0x31   : > { %742 = vmatprep.mubr.f32.mxu0 %v2178_v5  ;;  %838 = vmatprep.mubr.f32.mxu1 %v2178_v5 }
  0x32   : > { %484 = vperm.xlu1 %2088, %v2357_v22   ;;  %479 = vperm.xlu0 %2087, %v397_v23  }
  0x34   : > { %1989 = vmatmul.mubr.msk.f32.gmra.mrb[12].mxu0 %vm577_vm0, %v391_v14  ;;  %2005 = vmatmul.mubr.msk.f32.gmra.mrb[12].mxu1 %vm577_vm0, %v407_v24  ;;  %v2561_v14 = vsel %vm1026_vm4, 1, %v4141_v40 }
  0x35   : > { %748 = vmatprep.mubr.f32.mxu0 %v2178_v5  ;;  %844 = vmatprep.mubr.f32.mxu1 %v2178_v5 }
  0x36   : > { %494 = vperm.xlu1 %2088, %v2373_v25   ;;  %489 = vperm.xlu0 %2087, %v2378_v26  }
  0x38   : > { %1990 = vmatmul.mubr.msk.f32.gmra.mrb[14].mxu0 %vm577_vm0, %v392_v13  ;;  %2006 = vmatmul.mubr.msk.f32.gmra.mrb[14].mxu1 %vm577_vm0, %v408_v27  ;;  %v2558_v13 = vsel %vm1025_vm3, 1, %v4141_v40 }
  0x39   : > { %754 = vmatprep.mubr.f32.mxu0 %v2178_v5  ;;  %850 = vmatprep.mubr.f32.mxu1 %v2178_v5 }
  0x3a   : > { %504 = vperm.xlu1 %2088, %v402_v9   ;;  %499 = vperm.xlu0 %2087, %v2286_v6   ;;  %v2548_v9 = vsel %vm1023_vm1, 1, %v4141_v40 }
  0x3c   : > { %1991 = vmatmul.mubr.msk.f32.gmra.mrb[16].mxu0 %vm577_vm0, %v393_v17  ;;  %2007 = vmatmul.mubr.msk.f32.gmra.mrb[16].mxu1 %vm577_vm0, %v409_v28  ;;  %v2568_v17 = vsel %vm1027_vm5, 1, %v4141_v40 }
  0x3d   : > { %760 = vmatprep.mubr.f32.mxu0 %v2178_v5  ;;  %856 = vmatprep.mubr.f32.mxu1 %v2178_v5 }
  0x3e   : > { %514 = vperm.xlu1 %2088, %v404_v15   ;;  %509 = vperm.xlu0 %2087, %v403_v12   ;;  %v996_v12 = vld [vmem:[%s2440_s15 + $0xa8] sm:$0xff]  ;;  %v997_v15 = vld [vmem:[%s2440_s15 + $0xb0] sm:$0xff] }
  0x3f   : > { %vm1028_vm6 = vcmp.gt.f32.partialorder %v996_v12, 0.5  ;;  %vm1029_vm7 = vcmp.gt.f32.partialorder %v997_v15, 0.5  ;;  %v2737_v15 = vshrl.u32 %v4140_v11, 7 }
  0x40   : > { %1992 = vmatmul.mubr.msk.f32.gmra.mrb[18].mxu0 %vm577_vm0, %v394_v16  ;;  %2008 = vmatmul.mubr.msk.f32.gmra.mrb[18].mxu1 %vm577_vm0, %v410_v29  ;;  %v998_v16 = vld [vmem:[%s2440_s15 + $0xb8] sm:$0xff] }
  0x41   : > { %766 = vmatprep.mubr.f32.mxu0 %v2178_v5  ;;  %862 = vmatprep.mubr.f32.mxu1 %v2178_v5  ;;  %vm1030_vm8 = vcmp.gt.f32.partialorder %v998_v16, 0.5  ;;  %4197 = vst [vmem:[#allocation15_spill] sm:$0xff] %v2737_v15 }
  0x42   : > { %524 = vperm.xlu1 %2088, %v406_v21   ;;  %519 = vperm.xlu0 %2087, %v405_v18   ;;  %v2571_v18 = vsel %vm1028_vm6, 1, %v4141_v40  ;;  %v2578_v21 = vsel %vm1029_vm7, 1, %v4141_v40 }
  0x44   : > { %1993 = vmatmul.mubr.msk.f32.gmra.mrb[20].mxu0 %vm577_vm0, %v395_v20  ;;  %2009 = vmatmul.mubr.msk.f32.gmra.mrb[20].mxu1 %vm577_vm0, %v411_v30  ;;  %v1000_v20 = vld [vmem:[%s2440_s15 + $0xc8] sm:$0xff] }
  0x45   : > { %772 = vmatprep.mubr.f32.mxu0 %v2178_v5  ;;  %868 = vmatprep.mubr.f32.mxu1 %v2178_v5  ;;  %vm1032_vm10 = vcmp.gt.f32.partialorder %v1000_v20, 0.5 }
  0x46   : > { %534 = vperm.xlu1 %2088, %v408_v27   ;;  %529 = vperm.xlu0 %2087, %v407_v24   ;;  %v1002_v24 = vld [vmem:[%s2440_s15 + $0xd8] sm:$0xff]  ;;  %v1003_v27 = vld [vmem:[%s2440_s15 + $0xe0] sm:$0xff] }
  0x47   : > { %vm1034_vm12 = vcmp.gt.f32.partialorder %v1002_v24, 0.5  ;;  %vm1035_vm13 = vcmp.gt.f32.partialorder %v1003_v27, 0.5 }
  0x48   : > { %1994 = vmatmul.mubr.msk.f32.gmra.mrb[22].mxu0 %vm577_vm0, %v396_v19  ;;  %2010 = vmatmul.mubr.msk.f32.gmra.mrb[22].mxu1 %vm577_vm0, %v412_v31  ;;  %v999_v19 = vld [vmem:[%s2440_s15 + $0xc0] sm:$0xff] }
  0x49   : > { %778 = vmatprep.mubr.f32.mxu0 %v2178_v5  ;;  %874 = vmatprep.mubr.f32.mxu1 %v2178_v5  ;;  %vm1031_vm9 = vcmp.gt.f32.partialorder %v999_v19, 0.5 }
  0x4a   : > { %544 = vperm.xlu1 %2088, %v410_v29   ;;  %539 = vperm.xlu0 %2087, %v409_v28   ;;  %v1004_v28 = vld [vmem:[%s2440_s15 + $0xe8] sm:$0xff] }
  0x4b   : > { %vm1036_vm14 = vcmp.gt.f32.partialorder %v1004_v28, 0.5  ;;  %v2767_v28 = vld [vmem:[%s4137_s3 + $0x10] ss:$0 sm:$0xff] }
  0x4c   : > { %1995 = vmatmul.mubr.msk.f32.gmra.mrb[24].mxu0 %vm577_vm0, %v397_v23  ;;  %2011 = vmatmul.mubr.msk.f32.gmra.mrb[24].mxu1 %vm577_vm0, %v413_v32  ;;  %v1001_v23 = vld [vmem:[%s2440_s15 + $0xd0] sm:$0xff] }
  0x4d   : > { %784 = vmatprep.mubr.f32.mxu0 %v2178_v5  ;;  %880 = vmatprep.mubr.f32.mxu1 %v2178_v5  ;;  %vm1033_vm11 = vcmp.gt.f32.partialorder %v1001_v23, 0.5 }
  0x4e   : > { %554 = vperm.xlu1 %2088, %v412_v31   ;;  %549 = vperm.xlu0 %2087, %v411_v30   ;;  %v2598_v29 = vsel %vm1033_vm11, 1, %v4141_v40  ;;  %v2601_v30 = vsel %vm1034_vm12, 1, %v4141_v40  ;;  %v1005_v31 = vld [vmem:[%s2440_s15 + $0xf0] sm:$0xff] }
  0x50   : > { %1996 = vmatmul.mubr.msk.f32.gmra.mrb[26].mxu0 %vm577_vm0, %v2357_v22  ;;  %2012 = vmatmul.mubr.msk.f32.gmra.mrb[26].mxu1 %vm577_vm0, %v414_v33  ;;  %v2581_v22 = vsel %vm1030_vm8, 1, %v4141_v40 }
  0x51   : > { %790 = vmatprep.mubr.f32.mxu0 %v2178_v5  ;;  %886 = vmatprep.mubr.f32.mxu1 %v2178_v5 }
  0x52   : > { %564 = vperm.xlu1 %2088, %v414_v33   ;;  %559 = vperm.xlu0 %2087, %v413_v32   ;;  %v2607_v32 = vsel %vm1035_vm13, 1, %v4141_v40  ;;  %v2610_v33 = vsel %vm1036_vm14, 1, %v4141_v40 }
  0x54   : > { %1997 = vmatmul.mubr.msk.f32.gmra.mrb[28].mxu0 %vm577_vm0, %v2378_v26  ;;  %2013 = vmatmul.mubr.msk.f32.gmra.mrb[28].mxu1 %vm577_vm0, %v415_v34  ;;  %v2591_v26 = vsel %vm1032_vm10, 1, %v4141_v40 }
  0x55   : > { %796 = vmatprep.mubr.f32.mxu0 %v2178_v5  ;;  %892 = vmatprep.mubr.f32.mxu1 %v2178_v5  ;;  %v2538_v5 = vsel %vm1021_vm15, 1, %v4141_v40  ;;  %vm1037_vm15 = vcmp.gt.f32.partialorder %v1005_v31, 0.5 }
  0x56   : > { %574 = vperm.xlu1 %2088, %v416_v37   ;;  %569 = vperm.xlu0 %2087, %v415_v34   ;;  %v2615_v34 = vsel %vm1037_vm15, 1, %v4141_v40 }
  0x58   : > { %1998 = vmatmul.mubr.msk.f32.gmra.mrb[30].mxu0 %vm577_vm0, %v2373_v25  ;;  %2014 = vmatmul.mubr.msk.f32.gmra.mrb[30].mxu1 %vm577_vm0, %v416_v37  ;;  %vm1022_vm0 = vcmp.gt.f32.partialorder %v990_v0, 0.5  ;;  %v2588_v25 = vsel %vm1031_vm9, 1, %v4141_v40 }
  0x59   : > { %v2541_v6 = vsel %vm1022_vm0, 1, %v4141_v40 }
  0x5a   : > { %2090 = vset.pattern.permute.xlu1 %v4141_v40  ;;  %2089 = vset.pattern.permute.xlu0 %v4141_v40 }
  0x5b   : > { %1075 = vperm.xlu1 %2090, %v2466_v41   ;;  %1072 = vperm.xlu0 %2089, %v2469_v42  }
  0x5f   : > { %1078 = vperm.xlu1 %2090, %v2478_v45   ;;  %1081 = vperm.xlu0 %2089, %v2481_v46  }
  0x63   : > { %1084 = vperm.xlu1 %2090, %v2488_v49   ;;  %1087 = vperm.xlu0 %2089, %v2491_v50  }
  0x67   : > { %1090 = vperm.xlu1 %2090, %v2498_v53   ;;  %1093 = vperm.xlu0 %2089, %v2501_v54  }
  0x6b   : > { %1096 = vperm.xlu1 %2090, %v2508_v57   ;;  %1099 = vperm.xlu0 %2089, %v2511_v58  }
  0x6f   : > { %1102 = vperm.xlu1 %2090, %v2518_v61   ;;  %1105 = vperm.xlu0 %2089, %v2521_v62  }
  0x73   : > { %1108 = vperm.xlu1 %2090, %v2528_v1   ;;  %1111 = vperm.xlu0 %2089, %v2531_v2  }
  0x77   : > { %1114 = vperm.xlu1 %2090, %v2538_v5   ;;  %1117 = vperm.xlu0 %2089, %v2541_v6  }
  0x7b   : > { %1120 = vperm.xlu1 %2090, %v2548_v9   ;;  %1123 = vperm.xlu0 %2089, %v2551_v10  }
  0x7f   : > { %1126 = vperm.xlu1 %2090, %v2558_v13   ;;  %1129 = vperm.xlu0 %2089, %v2561_v14  }
  0x83   : > { %1132 = vperm.xlu1 %2090, %v2568_v17   ;;  %1135 = vperm.xlu0 %2089, %v2571_v18  }
  0x87   : > { %1138 = vperm.xlu1 %2090, %v2578_v21   ;;  %1141 = vperm.xlu0 %2089, %v2581_v22  }
  0x8b   : > { %1144 = vperm.xlu1 %2090, %v2588_v25   ;;  %1147 = vperm.xlu0 %2089, %v2591_v26  }
  0x8f   : > { %1150 = vperm.xlu1 %2090, %v2598_v29   ;;  %1153 = vperm.xlu0 %2089, %v2601_v30  }
  0x93   : > { %1156 = vperm.xlu1 %2090, %v2607_v32   ;;  %1159 = vperm.xlu0 %2089, %v2610_v33  }
  0x97   : > { %1162 = vperm.xlu1 %2090, %v2615_v34   ;;  %2091 = vset.pattern.permute.xlu0 %v2180_v35 }
  0x98   : > { %1275 = vperm.xlu0 %2091, %v2469_v42  }
  0x99   : > { %v2620_v36 = vpop.permute.xlu1 %429  ;;  %v2622_v37 = vpop.permute.xlu0 %419 }
  0x9b   : > { %2092 = vset.pattern.permute.xlu1 %v2180_v35 }
  0x9c   : > { %1278 = vperm.xlu1 %2092, %v2466_v41   ;;  %1284 = vperm.xlu0 %2091, %v2481_v46  }
  0x9d   : > { %v2627_v38 = vpop.permute.xlu1 %434  ;;  %v2629_v39 = vpop.permute.xlu0 %424 }
  0xa0   : > { %1281 = vperm.xlu1 %2092, %v2478_v45   ;;  %1290 = vperm.xlu0 %2091, %v2491_v50  }
  0xa1   : > { %v2633_v43 = vpop.permute.xlu1 %444  ;;  %v2635_v42 = vpop.permute.xlu0 %439 }
  0xa4   : > { %1287 = vperm.xlu1 %2092, %v2488_v49   ;;  %1296 = vperm.xlu0 %2091, %v2501_v54  }
  0xa5   : > { %v2639_v44 = vpop.permute.xlu1 %454  ;;  %v2641_v41 = vpop.permute.xlu0 %449 }
  0xa8   : > { %1293 = vperm.xlu1 %2092, %v2498_v53   ;;  %1302 = vperm.xlu0 %2091, %v2511_v58  }
  0xa9   : > { %v2645_v46 = vpop.permute.xlu1 %464  ;;  %v2647_v45 = vpop.permute.xlu0 %459 }
  0xac   : > { %1299 = vperm.xlu1 %2092, %v2508_v57   ;;  %1308 = vperm.xlu0 %2091, %v2521_v62  }
  0xad   : > { %v2651_v47 = vpop.permute.xlu1 %474  ;;  %v2653_v48 = vpop.permute.xlu0 %469 }
  0xb0   : > { %1305 = vperm.xlu1 %2092, %v2518_v61   ;;  %1314 = vperm.xlu0 %2091, %v2531_v2  }
  0xb1   : > { %v2657_v49 = vpop.permute.xlu1 %484  ;;  %v2659_v50 = vpop.permute.xlu0 %479 }
  0xb2   : > { %4189 = vst [vmem:[#allocation7_spill] sm:$0xff] %v2657_v49  ;;  %4190 = vst [vmem:[#allocation8_spill] sm:$0xff] %v2659_v50 }
  0xb4   : > { %1311 = vperm.xlu1 %2092, %v2528_v1   ;;  %1320 = vperm.xlu0 %2091, %v2541_v6   ;;  %v1006_v1 = vld [vmem:[%s2440_s15 + $0xf8] sm:$0xff]  ;;  %s2101_s15 = sshll.u32 %s2183_s21, 4  ;;  %s2102_s15 = int_to_ptr.vmem [resolvable:$false] %s2101_s15 }
  0xb5   : > { %v2663_v51 = vpop.permute.xlu1 %494  ;;  %v2665_v52 = vpop.permute.xlu0 %489  ;;  %vm1038_vm0 = vcmp.gt.f32.partialorder %v1006_v1, 0.5  ;;  %s2103_s16 = scalar_lea.vmem %s2102_s15, 64  ;;  %p2104_p1 = scmp.lt.s32.totalorder %s4087_s10, %s2102_s15 }
  0xb6   : > { %4191 = vst [vmem:[#allocation9_spill] sm:$0xff] %v2663_v51  ;;  %4192 = vst [vmem:[#allocation10_spill] sm:$0xff] %v2665_v52  ;;  %v1070_v6 = vsel %vm1038_vm0, 1, %v4141_v40  ;;  %p2105_p2 = scmp.lt.s32.totalorder %s2103_s16, %s2097_s14 }
  0xb8   : > { %1317 = vperm.xlu1 %2092, %v2538_v5   ;;  %1326 = vperm.xlu0 %2091, %v2551_v10   ;;  %p2106_p3 = por %p2105_p2, %p2104_p1 }
  0xb9   : > { %v2669_v53 = vpop.permute.xlu1 %504  ;;  %v2671_v54 = vpop.permute.xlu0 %499 }
  0xba   : > { %p2107_p5 = pnand %p2106_p3, %p2100_p0 }
  0xbc   : > { %1323 = vperm.xlu1 %2092, %v2548_v9   ;;  %1332 = vperm.xlu0 %2091, %v2561_v14   ;;  %v971_v14 = vld [vmem:[%s2729_s9] sm:$0x3] }
  0xbd   : > { %v2675_v55 = vpop.permute.xlu1 %514  ;;  %v2677_v56 = vpop.permute.xlu0 %509  ;;  %vm972_vm1 = vcmp.gt.f32.partialorder %v971_v14, 0.5 }
  0xc0   : > { %1329 = vperm.xlu1 %2092, %v2558_v13   ;;  %1338 = vperm.xlu0 %2091, %v2571_v18   ;;  %v1202_v18 = vsub.s32 0, %v2737_v15 }
  0xc1   : > { %v2681_v57 = vpop.permute.xlu1 %524  ;;  %v2683_v58 = vpop.permute.xlu0 %519 }
  0xc4   : > { %1335 = vperm.xlu1 %2092, %v2568_v17   ;;  %1344 = vperm.xlu0 %2091, %v2581_v22   ;;  %v1199_v22 = vsel %vm972_vm1, 1, %v4141_v40 }
  0xc5   : > { %v2687_v59 = vpop.permute.xlu1 %534  ;;  %v2689_v60 = vpop.permute.xlu0 %529  ;;  %v2755_v23 = vrot.slane %v1199_v22, %v1202_v18 }
  0xc7   : > { %vm1208_vm4 = vcmp.eq.s32.totalorder %v2755_v23, 1 }
  0xc8   : > { %1341 = vperm.xlu1 %2092, %v2578_v21   ;;  %1350 = vperm.xlu0 %2091, %v2591_v26   ;;  %v1206_v21 = vsub.s32 1, %v2737_v15  ;;  %v973_v26 = vld [vmem:[%s2753_s11] sm:$0x3] }
  0xc9   : > { %v2693_v61 = vpop.permute.xlu1 %544  ;;  %v2695_v62 = vpop.permute.xlu0 %539  ;;  %vm974_vm3 = vcmp.gt.f32.partialorder %v973_v26, 0.5 }
  0xca   : > { %v2762_v27 = vrot.slane %v1199_v22, %v1206_v21 }
  0xcc   : > { %1347 = vperm.xlu1 %2092, %v2588_v25   ;;  %1356 = vperm.xlu0 %2091, %v2601_v30   ;;  %vm1209_vm6 = vcmp.eq.s32.totalorder %v2762_v27, 1 }
  0xcd   : > { %v2699_v63 = vpop.permute.xlu1 %554  ;;  %v2701_v0 = vpop.permute.xlu0 %549 }
  0xd0   : > { %1353 = vperm.xlu1 %2092, %v2598_v29   ;;  %1362 = vperm.xlu0 %2091, %v2610_v33   ;;  %v2774_v33 = vld [vmem:[%s4137_s3 + $0x18] ss:$0 sm:$0xff] }
  0xd1   : > { %v2706_v2 = vpop.permute.xlu1 %564  ;;  %v2708_v3 = vpop.permute.xlu0 %559 }
  0xd2   : > { %4193 = vst [vmem:[#allocation11_spill] sm:$0xff] %v2706_v2  ;;  %4194 = vst [vmem:[#allocation12_spill] sm:$0xff] %v2708_v3 }
  0xd4   : > { %1359 = vperm.xlu1 %2092, %v2607_v32   ;;  %1365 = vperm.xlu0 %2091, %v2615_v34  }
  0xd5   : > { %v2712_v4 = vpop.permute.xlu1 %574  ;;  %v2714_v5 = vpop.permute.xlu0 %569 }
  0xd6   : > { %4195 = vst [vmem:[#allocation13_spill] sm:$0xff] %v2712_v4  ;;  %4196 = vst [vmem:[#allocation14_spill] sm:$0xff] %v2714_v5  ;;  %v4202_v4 = vmov 0  }
  0xd7   : > { %v1402_v51 = vsel %vm974_vm3, 1, %v4202_v4 }
  0xd8   : > { %2093 = vset.pattern.permute.xlu1 %v4141_v40 }
  0xd9   : > { %1165 = vperm.xlu1 %2093, %v1070_v6  }
  0xda   : > { %v2718_v7 = vpop.permute.xlu1 %1075  ;;  %v1073_v8 = vpop.permute.xlu0 %1072 }
  0xdb   : > { %vm1167_vm2 = vcmp.eq.s32.totalorder %v1073_v8, 1  ;;  %vm1168_vm5 = vcmp.eq.s32.totalorder %v2718_v7, 1 }
  0xdc   : > { %vm2791_vm7 = vmxor %vm1167_vm2, %vm1208_vm4 }
  0xdd   : > { %2094 = vset.pattern.permute.xlu1 %v2180_v35  ;;  %vm2801_vm8 = vmxor %vm1167_vm2, %vm1209_vm6 }
  0xde   : > { %1368 = vperm.xlu1 %2094, %v1070_v6   ;;  %v2721_v9 = vpop.permute.xlu1 %1078  ;;  %v2723_v10 = vpop.permute.xlu0 %1081  ;;  %vm2822_vm10 = vmxor %vm1168_vm5, %vm1208_vm4 }
  0xdf   : > { %vm1169_vm9 = vcmp.eq.s32.totalorder %v2721_v9, 1  ;;  %vm2837_vm11 = vmxor %vm1168_vm5, %vm1209_vm6  ;;  %vm1170_vm12 = vcmp.eq.s32.totalorder %v2723_v10, 1 }
  0xe0   : > { %vm2853_vm13 = vmxor %vm1169_vm9, %vm1208_vm4 }
  0xe1   : > { %vm2867_vm15 = vmxor %vm1169_vm9, %vm1209_vm6 }
  0xe2   : > { %v2731_v12 = vpop.permute.xlu1 %1084  ;;  %v2733_v13 = vpop.permute.xlu0 %1087  ;;  %vm2883_vm0 = vmxor %vm1170_vm12, %vm1208_vm4 }
  0xe3   : > { %vm1171_vm14 = vcmp.eq.s32.totalorder %v2731_v12, 1  ;;  %vm2903_vm1 = vmxor %vm1170_vm12, %vm1209_vm6  ;;  %vm1172_vm2 = vcmp.eq.s32.totalorder %v2733_v13, 1 }
  0xe6   : > { %v2739_v16 = vpop.permute.xlu1 %1090  ;;  %v2741_v17 = vpop.permute.xlu0 %1093 }
  0xe7   : > { %vm1173_vm12 = vcmp.eq.s32.totalorder %v2739_v16, 1 }
  0xea   : > { %v2744_v19 = vpop.permute.xlu1 %1096  ;;  %v2746_v20 = vpop.permute.xlu0 %1099 }
  0xee   : > { %v2757_v24 = vpop.permute.xlu1 %1102  ;;  %v2759_v25 = vpop.permute.xlu0 %1105 }
  0xef   : > { %v708_v29 = vpop.f32.mrb[0].mxu0  ;;  %v804_v30 = vpop.f32.mrb[0].mxu1 }
  0xf0   : > { %v709_v31 = vadd.f32 %v708_v29, %v2622_v37  ;;  %v805_v32 = vadd.f32 %v804_v30, %v2671_v54  ;;  %v710_v34 = vpop.f32.mrb[1].mxu0  ;;  %v806_v35 = vpop.f32.mrb[1].mxu1 }
  0xf1   : > { %v711_v1 = vadd.f32 %v710_v34, %v2622_v37  ;;  %v807_v6 = vadd.f32 %v806_v35, %v2671_v54  ;;  %v2845_v34 = vrot.slane %v1402_v51, %v1202_v18 }
  0xf2   : > { %v2780_v14 = vadd.f32 %v2767_v28, %v709_v31  ;;  %v2782_v22 = vpop.permute.xlu1 %1108  ;;  %v2784_v29 = vpop.permute.xlu0 %1111  ;;  %v2872_v2 = vadd.f32 %v2767_v28, %v805_v32 }
  0xf3   : > { %v2796_v54 = vadd.f32 %v2774_v33, %v711_v1  ;;  %v714_v30 = vpop.f32.mrb[2].mxu0  ;;  %v810_v31 = vpop.f32.mrb[2].mxu1  ;;  %v2888_v49 = vadd.f32 %v2774_v33, %v807_v6 }
  0xf4   : > { %v1477_v35 = vsel %vm2791_vm7, %v2780_v14, 1e+09  ;;  %v715_v11 = vadd.f32 %v714_v30, %v2629_v39  ;;  %v811_v40 = vadd.f32 %v810_v31, %v2669_v53  ;;  %v716_v15 = vpop.f32.mrb[3].mxu0  ;;  %v812_v1 = vpop.f32.mrb[3].mxu1  ;;  %4214 = vst [vmem:[#allocation19_spill] sm:$0xff] %v2872_v2 }
  0xf5   : > { %v1478_v8 = vsel %vm2801_vm8, %v2796_v54, 1e+09  ;;  %v717_v5 = vadd.f32 %v716_v15, %v2629_v39  ;;  %v813_v37 = vadd.f32 %v812_v1, %v2669_v53  ;;  %v2847_v1 = vrot.slane %v1402_v51, %v1206_v21  ;;  %4217 = vst [vmem:[#allocation20_spill] sm:$0xff] %v2888_v49 }
  0xf6   : > { %v2827_v4 = vadd.f32 %v2767_v28, %v715_v11  ;;  %v2829_v26 = vpop.permute.xlu1 %1114  ;;  %v2831_v31 = vpop.permute.xlu0 %1117  ;;  %v2891_v32 = vadd.f32 %v2767_v28, %v811_v40 }
  0xf7   : > { %4206 = vst [vmem:[#allocation17_spill] sm:$0xff] %v2831_v31  ;;  %v2843_v53 = vadd.f32 %v2774_v33, %v717_v5  ;;  %v720_v15 = vpop.f32.mrb[4].mxu0  ;;  %v816_v11 = vpop.f32.mrb[4].mxu1  ;;  %v2894_v39 = vadd.f32 %v2774_v33, %v813_v37 }
  0xf8   : > { %4205 = vst [vmem:[#allocation16_spill] sm:$0xff] %v2827_v4  ;;  %v1479_v5 = vsel %vm2822_vm10, %v2827_v4, 1e+09  ;;  %v721_v31 = vadd.f32 %v720_v15, %v2620_v36  ;;  %v817_v18 = vadd.f32 %v816_v11, %v2677_v56  ;;  %v722_v51 = vpop.f32.mrb[5].mxu0  ;;  %v818_v21 = vpop.f32.mrb[5].mxu1  ;;  %4218 = vst [vmem:[#allocation21_spill] sm:$0xff] %v2891_v32 }
  0xf9   : > { %4209 = vst [vmem:[#allocation18_spill] sm:$0xff] %v2843_v53  ;;  %v1480_v30 = vsel %vm2837_vm11, %v2843_v53, 1e+09  ;;  %v723_v15 = vadd.f32 %v722_v51, %v2620_v36  ;;  %v819_v11 = vadd.f32 %v818_v21, %v2677_v56  ;;  %4219 = vst [vmem:[#allocation22_spill] sm:$0xff] %v2894_v39 }
  0xfa   : > { %v2897_v36 = vadd.f32 %v2767_v28, %v721_v31  ;;  %v1121_v56 = vpop.permute.xlu1 %1120  ;;  %v1124_v51 = vpop.permute.xlu0 %1123  ;;  %v2909_v40 = vadd.f32 %v2767_v28, %v817_v18 }
  0xfb   : > { %v2912_v6 = vadd.f32 %v2774_v33, %v723_v15  ;;  %v726_v37 = vpop.f32.mrb[6].mxu0  ;;  %v822_v31 = vpop.f32.mrb[6].mxu1  ;;  %vm1183_vm3 = vcmp.eq.s32.totalorder %v1121_v56, 1  ;;  %vm1184_vm5 = vcmp.eq.s32.totalorder %v1124_v51, 1  ;;  %v2918_v53 = vadd.f32 %v2774_v33, %v819_v11 }
  0xfc   : > { %4220 = vst [vmem:[#allocation23_spill] sm:$0xff] %v2897_v36  ;;  %4223 = vst [vmem:[#allocation24_spill] sm:$0xff] %v2909_v40  ;;  %v1481_v10 = vsel %vm2853_vm13, %v2897_v36, 1e+09  ;;  %v727_v4 = vadd.f32 %v726_v37, %v2627_v38  ;;  %v823_v3 = vadd.f32 %v822_v31, %v2675_v55  ;;  %v728_v15 = vpop.f32.mrb[7].mxu0  ;;  %v824_v56 = vpop.f32.mrb[7].mxu1 }
  0xfd   : > { %4224 = vst [vmem:[#allocation25_spill] sm:$0xff] %v2912_v6  ;;  %4225 = vst [vmem:[#allocation26_spill] sm:$0xff] %v2918_v53  ;;  %v1606_v50 = vmin.f32 %v1477_v35, %v1481_v10  ;;  %v1482_v7 = vsel %vm2867_vm15, %v2912_v6, 1e+09  ;;  %v729_v31 = vadd.f32 %v728_v15, %v2627_v38 }
  0xfe   : > { %vm2924_vm7 = vmxor %vm1183_vm3, %vm1208_vm4  ;;  %v2941_v36 = vmin.f32 %v1478_v8, %v1482_v7  ;;  %v2944_v35 = vadd.f32 %v2767_v28, %v727_v4  ;;  %v2947_v52 = vadd.f32 %v2767_v28, %v823_v3  ;;  %v1127_v18 = vpop.permute.xlu1 %1126  ;;  %v825_v4 = vadd.f32 %v824_v56, %v2675_v55 }
  0xff   : > { %vm2933_vm8 = vmxor %vm1183_vm3, %vm1209_vm6  ;;  %v1509_v37 = vsel %vm2924_vm7, %v2872_v2, 1e+09  ;;  %v1130_v2 = vpop.permute.xlu0 %1129  ;;  %v2964_v8 = vadd.f32 %v2774_v33, %v729_v31  ;;  %v732_v15 = vpop.f32.mrb[8].mxu0  ;;  %vm1185_vm11 = vcmp.eq.s32.totalorder %v1127_v18, 1 }
 0x100   : > { %4230 = vst [vmem:[#allocation27_spill] sm:$0xff] %v2947_v52  ;;  %v1510_v10 = vsel %vm2933_vm8, %v2888_v49, 1e+09  ;;  %vm1244_vm9 = vmxor %vm1184_vm5, %vm1208_vm4  ;;  %v828_v7 = vpop.f32.mrb[8].mxu1  ;;  %v1483_v51 = vsel %vm2883_vm0, %v2944_v35, 1e+09 }
 0x101   : > { %vm2958_vm10 = vmxor %vm1184_vm5, %vm1209_vm6  ;;  %v1511_v3 = vsel %vm1244_vm9, %v2891_v32, 1e+09  ;;  %v733_v32 = vadd.f32 %v732_v15, %v2635_v42  ;;  %v734_v56 = vpop.f32.mrb[9].mxu0  ;;  %v830_v31 = vpop.f32.mrb[9].mxu1  ;;  %v1607_v18 = vmin.f32 %v1479_v5, %v1483_v51  ;;  %v1484_v9 = vsel %vm2903_vm1, %v2964_v8, 1e+09 }
 0x102   : > { %v1616_v11 = vmin.f32 %v1511_v3, %v1509_v37  ;;  %v1512_v49 = vsel %vm2958_vm10, %v2894_v39, 1e+09  ;;  %vm2977_vm13 = vmxor %vm1185_vm11, %vm1208_vm4  ;;  %v2985_v37 = vadd.f32 %v2774_v33, %v825_v4  ;;  %v1133_v4 = vpop.permute.xlu1 %1132  ;;  %vm1186_vm3 = vcmp.eq.s32.totalorder %v1130_v2, 1 }
 0x103   : > { %v1654_v6 = vmin.f32 %v1512_v49, %v1510_v10  ;;  %vm2989_vm15 = vmxor %vm1185_vm11, %vm1209_vm6  ;;  %v3001_v49 = vmin.f32 %v1480_v30, %v1484_v9  ;;  %v3004_v21 = vadd.f32 %v2767_v28, %v733_v32  ;;  %v829_v10 = vadd.f32 %v828_v7, %v2683_v58  ;;  %v1136_v15 = vpop.permute.xlu0 %1135  ;;  %v738_v55 = vpop.f32.mrb[10].mxu0 }
 0x104   : > { %4235 = vst [vmem:[#allocation28_spill] sm:$0xff] %v2985_v37  ;;  %vm2997_vm0 = vmxor %vm1171_vm14, %vm1208_vm4  ;;  %v1513_v3 = vsel %vm2977_vm13, %v2909_v40, 1e+09  ;;  %v1514_v32 = vsel %vm2989_vm15, %v2918_v53, 1e+09  ;;  %v735_v7 = vadd.f32 %v734_v56, %v2635_v42  ;;  %v834_v9 = vpop.f32.mrb[10].mxu1 }
 0x105   : > { %vm3014_vm1 = vmxor %vm1171_vm14, %vm1209_vm6  ;;  %v1617_v30 = vmin.f32 %v1513_v3, %v1616_v11  ;;  %v1485_v40 = vsel %vm2997_vm0, %v3004_v21, 1e+09  ;;  %v3026_v12 = vadd.f32 %v2767_v28, %v829_v10  ;;  %v1655_v39 = vmin.f32 %v1514_v32, %v1654_v6  ;;  %v740_v38 = vpop.f32.mrb[11].mxu0  ;;  %v836_v3 = vpop.f32.mrb[11].mxu1 }
 0x106   : > { %vm1248_vm14 = vmxor %vm1186_vm3, %vm1208_vm4  ;;  %v831_v11 = vadd.f32 %v830_v31, %v2683_v58  ;;  %vm1174_vm5 = vcmp.eq.s32.totalorder %v2741_v17, 1  ;;  %v1608_v42 = vmin.f32 %v1606_v50, %v1485_v40  ;;  %v3036_v56 = vadd.f32 %v2774_v33, %v735_v7  ;;  %v3052_v10 = vpop.permute.xlu1 %1138 }
 0x107   : > { %4242 = vst [vmem:[#allocation29_spill] sm:$0xff] %v3026_v12  ;;  %vm1249_vm7 = vmxor %vm1186_vm3, %vm1209_vm6  ;;  %v1515_v2 = vsel %vm1248_vm14, %v2947_v52, 1e+09  ;;  %v739_v6 = vadd.f32 %v738_v55, %v2633_v43  ;;  %v835_v5 = vadd.f32 %v834_v9, %v2681_v57  ;;  %v3054_v32 = vpop.permute.xlu0 %1141  ;;  %vm1187_vm10 = vcmp.eq.s32.totalorder %v1133_v4, 1  ;;  %v744_v9 = vpop.f32.mrb[12].mxu0 }
 0x108   : > { %vm3043_vm8 = vmxor %vm1172_vm2, %vm1208_vm4  ;;  %v1618_v31 = vmin.f32 %v1515_v2, %v1617_v30  ;;  %v1516_v50 = vsel %vm1249_vm7, %v2985_v37, 1e+09  ;;  %v3049_v40 = vadd.f32 %v2774_v33, %v831_v11  ;;  %v1486_v55 = vsel %vm3014_vm1, %v3036_v56, 1e+09  ;;  %v840_v2 = vpop.f32.mrb[12].mxu1  ;;  %v746_v51 = vpop.f32.mrb[13].mxu0 }
 0x109   : > { %vm3060_vm9 = vmxor %vm1172_vm2, %vm1209_vm6  ;;  %v1657_v30 = vmin.f32 %v1655_v39, %v1516_v50  ;;  %v3068_v11 = vadd.f32 %v2767_v28, %v739_v6  ;;  %v3071_v53 = vmin.f32 %v2941_v36, %v1486_v55  ;;  %v3074_v13 = vadd.f32 %v2767_v28, %v835_v5  ;;  %v842_v50 = vpop.f32.mrb[13].mxu1 }
 0x10a   : > { %4245 = vst [vmem:[#allocation30_spill] sm:$0xff] %v3049_v40  ;;  %vm1250_vm2 = vmxor %vm1187_vm10, %vm1208_vm4  ;;  %vm1188_vm11 = vcmp.eq.s32.totalorder %v1136_v15, 1  ;;  %v741_v39 = vadd.f32 %v740_v38, %v2633_v43  ;;  %vm1175_vm13 = vcmp.eq.s32.totalorder %v2744_v19, 1  ;;  %v837_v6 = vadd.f32 %v836_v3, %v2681_v57  ;;  %v3097_v37 = vpop.permute.xlu1 %1144 }
 0x10b   : > { %4248 = vst [vmem:[#allocation31_spill] sm:$0xff] %v3074_v13  ;;  %v1487_v4 = vsel %vm3043_vm8, %v3068_v11, 1e+09  ;;  %vm1251_vm15 = vmxor %vm1187_vm10, %vm1209_vm6  ;;  %v1517_v36 = vsel %vm1250_vm2, %v3026_v12, 1e+09  ;;  %v745_v5 = vadd.f32 %v744_v9, %v2641_v41  ;;  %v3099_v52 = vpop.permute.xlu0 %1147  ;;  %vm1189_vm14 = vcmp.eq.s32.totalorder %v3052_v10, 1 }
 0x10c   : > { %v3088_v55 = vmin.f32 %v1607_v18, %v1487_v4  ;;  %v1620_v43 = vmin.f32 %v1618_v31, %v1517_v36  ;;  %v1518_v38 = vsel %vm1251_vm15, %v3049_v40, 1e+09  ;;  %vm1252_vm0 = vmxor %vm1188_vm11, %vm1208_vm4  ;;  %v3095_v58 = vadd.f32 %v2774_v33, %v741_v39  ;;  %v750_v39 = vpop.f32.mrb[14].mxu0  ;;  %v846_v4 = vpop.f32.mrb[14].mxu1 }
 0x10d   : > { %vm3105_vm1 = vmxor %vm1173_vm12, %vm1208_vm4  ;;  %v1659_v18 = vmin.f32 %v1657_v30, %v1518_v38  ;;  %v1519_v3 = vsel %vm1252_vm0, %v3074_v13, 1e+09  ;;  %v3111_v31 = vadd.f32 %v2774_v33, %v837_v6  ;;  %v3114_v9 = vadd.f32 %v2767_v28, %v745_v5  ;;  %v752_v6 = vpop.f32.mrb[15].mxu0  ;;  %v848_v38 = vpop.f32.mrb[15].mxu1 }
 0x10e   : > { %vm1253_vm3 = vmxor %vm1188_vm11, %vm1209_vm6  ;;  %v1622_v36 = vmin.f32 %v1620_v43, %v1519_v3  ;;  %v1488_v40 = vsel %vm3060_vm9, %v3095_v58, 1e+09  ;;  %v841_v30 = vadd.f32 %v840_v2, %v2689_v60  ;;  %vm1176_vm7 = vcmp.eq.s32.totalorder %v2746_v20, 1 }
 0x10f   : > { %4251 = vst [vmem:[#allocation32_spill] sm:$0xff] %v3111_v31  ;;  %v1646_v5 = vmin.f32 %v3001_v49, %v1488_v40  ;;  %v1520_v12 = vsel %vm1253_vm3, %v3111_v31, 1e+09  ;;  %v1489_v15 = vsel %vm3105_vm1, %v3114_v9, 1e+09  ;;  %vm3134_vm8 = vmxor %vm1173_vm12, %vm1209_vm6  ;;  %v747_v49 = vadd.f32 %v746_v51, %v2641_v41  ;;  %v3144_v40 = vpop.permute.xlu1 %1150  ;;  %v3146_v57 = vpop.permute.xlu0 %1153 }
 0x110   : > { %v1661_v2 = vmin.f32 %v1659_v18, %v1520_v12  ;;  %v3138_v43 = vmin.f32 %v1608_v42, %v1489_v15  ;;  %v3141_v3 = vadd.f32 %v2767_v28, %v841_v30  ;;  %vm3152_vm12 = vmxor %vm1189_vm14, %vm1208_vm4  ;;  %vm1190_vm9 = vcmp.eq.s32.totalorder %v3054_v32, 1  ;;  %v756_v51 = vpop.f32.mrb[16].mxu0  ;;  %v852_v18 = vpop.f32.mrb[16].mxu1 }
 0x111   : > { %v843_v12 = vadd.f32 %v842_v50, %v2689_v60  ;;  %v751_v42 = vadd.f32 %v750_v39, %v2639_v44  ;;  %v847_v41 = vadd.f32 %v846_v4, %v2687_v59  ;;  %vm3164_vm10 = vmxor %vm1174_vm5, %vm1208_vm4  ;;  %v3172_v60 = vadd.f32 %v2774_v33, %v747_v49  ;;  %v758_v39 = vpop.f32.mrb[17].mxu0  ;;  %v854_v4 = vpop.f32.mrb[17].mxu1 }
 0x112   : > { %4254 = vst [vmem:[#allocation33_spill] sm:$0xff] %v3141_v3  ;;  %v1521_v15 = vsel %vm3152_vm12, %v3141_v3, 1e+09  ;;  %vm1191_vm2 = vcmp.eq.s32.totalorder %v3097_v37, 1  ;;  %v753_v50 = vadd.f32 %v752_v6, %v2639_v44  ;;  %vm3180_vm11 = vmxor %vm1189_vm14, %vm1209_vm6  ;;  %v757_v6 = vadd.f32 %v756_v51, %v2647_v45 }
 0x113   : > { %v1624_v13 = vmin.f32 %v1622_v36, %v1521_v15  ;;  %v3185_v16 = vadd.f32 %v2774_v33, %v843_v12  ;;  %v3188_v49 = vadd.f32 %v2767_v28, %v751_v42  ;;  %v3191_v3 = vadd.f32 %v2767_v28, %v847_v41  ;;  %vm1256_vm15 = vmxor %vm1190_vm9, %vm1208_vm4  ;;  %v3205_v12 = vpop.permute.xlu1 %1156  ;;  %v762_v30 = vpop.f32.mrb[18].mxu0 }
 0x114   : > { %v1490_v44 = vsel %vm3134_vm8, %v3172_v60, 1e+09  ;;  %v3201_v10 = vadd.f32 %v2774_v33, %v753_v50  ;;  %v849_v36 = vadd.f32 %v848_v38, %v2687_v59  ;;  %vm1225_vm0 = vmxor %vm1174_vm5, %vm1209_vm6  ;;  %v3219_v38 = vpop.permute.xlu0 %1159  ;;  %v858_v50 = vpop.f32.mrb[18].mxu1  ;;  %vm1177_vm3 = vcmp.eq.s32.totalorder %v2757_v24, 1 }
 0x115   : > { %4261 = vst [vmem:[#allocation34_spill] sm:$0xff] %v3185_v16  ;;  %4262 = vst [vmem:[#allocation35_spill] sm:$0xff] %v3191_v3  ;;  %v1647_v42 = vmin.f32 %v3071_v53, %v1490_v44  ;;  %v1522_v7 = vsel %vm3180_vm11, %v3185_v16, 1e+09  ;;  %v1491_v41 = vsel %vm3164_vm10, %v3188_v49, 1e+09 }
 0x116   : > { %v1523_v59 = vsel %vm1256_vm15, %v3191_v3, 1e+09  ;;  %vm3225_vm1 = vmxor %vm1175_vm13, %vm1208_vm4  ;;  %v1663_v53 = vmin.f32 %v1661_v2, %v1522_v7  ;;  %v1611_v31 = vmin.f32 %v3088_v55, %v1491_v41  ;;  %v1492_v15 = vsel %vm1225_vm0, %v3201_v10, 1e+09  ;;  %v764_v2 = vpop.f32.mrb[19].mxu0  ;;  %v860_v7 = vpop.f32.mrb[19].mxu1 }
 0x117   : > { %v1626_v51 = vmin.f32 %v1624_v13, %v1523_v59  ;;  %vm3235_vm5 = vmxor %vm1175_vm13, %vm1209_vm6  ;;  %v3239_v16 = vmin.f32 %v1646_v5, %v1492_v15  ;;  %v3242_v3 = vadd.f32 %v2774_v33, %v849_v36  ;;  %v3245_v55 = vadd.f32 %v2767_v28, %v757_v6  ;;  %v3260_v6 = vpop.permute.xlu1 %1162  ;;  %v864_v41 = vpop.f32.mrb[20].mxu1 }
 0x118   : > { %v853_v13 = vadd.f32 %v852_v18, %v2695_v62  ;;  %vm1178_vm14 = vcmp.eq.s32.totalorder %v2759_v25, 1  ;;  %vm3254_vm13 = vmxor %vm1190_vm9, %vm1209_vm6  ;;  %v759_v5 = vadd.f32 %v758_v39, %v2647_v45  ;;  %v855_v36 = vadd.f32 %v854_v4, %v2695_v62  ;;  %v768_v4 = vpop.f32.mrb[20].mxu0 }
 0x119   : > { %4267 = vst [vmem:[#allocation36_spill] sm:$0xff] %v3242_v3  ;;  %4268 = vst [vmem:[#allocation37_spill] sm:$0xff] %v3245_v55  ;;  %vm1411_vm8 = vcmp.eq.s32.totalorder %v2845_v34, 1  ;;  %vm1179_vm9 = vcmp.eq.s32.totalorder %v2782_v22, 1  ;;  %v1524_v45 = vsel %vm3254_vm13, %v3242_v3, 1e+09  ;;  %v763_v39 = vadd.f32 %v762_v30, %v2645_v46 }
 0x11a   : > { %vm3267_vm12 = vmxor %vm1176_vm7, %vm1208_vm4  ;;  %v1493_v62 = vsel %vm3225_vm1, %v3245_v55, 1e+09  ;;  %v3279_v32 = vadd.f32 %v2767_v28, %v853_v13  ;;  %vm1412_vm10 = vcmp.eq.s32.totalorder %v2847_v1, 1  ;;  %v1665_v59 = vmin.f32 %v1663_v53, %v1524_v45  ;;  %v770_v19 = vpop.f32.mrb[21].mxu0  ;;  %v866_v30 = vpop.f32.mrb[21].mxu1 }
 0x11b   : > { %vm1258_vm11 = vmxor %vm1191_vm2, %vm1208_vm4  ;;  %v1612_v15 = vmin.f32 %v3138_v43, %v1493_v62  ;;  %v3289_v17 = vadd.f32 %v2774_v33, %v759_v5  ;;  %v3292_v13 = vadd.f32 %v2774_v33, %v855_v36  ;;  %vm1192_vm0 = vcmp.eq.s32.totalorder %v3099_v52, 1  ;;  %v1276_v5 = vpop.permute.xlu0 %1275  ;;  %v774_v44 = vpop.f32.mrb[22].mxu0 }
 0x11c   : > { %4273 = vst [vmem:[#allocation38_spill] sm:$0xff] %v3279_v32  ;;  %vm1259_vm15 = vmxor %vm1191_vm2, %vm1209_vm6  ;;  %v1525_v3 = vsel %vm1258_vm11, %v3279_v32, 1e+09  ;;  %v3301_v53 = vadd.f32 %v2767_v28, %v763_v39  ;;  %v859_v43 = vadd.f32 %v858_v50, %v2693_v61  ;;  %vm1193_vm2 = vcmp.eq.s32.totalorder %v3144_v40, 1  ;;  %v870_v32 = vpop.f32.mrb[22].mxu1 }
 0x11d   : > { %4274 = vst [vmem:[#allocation39_spill] sm:$0xff] %v3289_v17  ;;  %4275 = vst [vmem:[#allocation40_spill] sm:$0xff] %v3292_v13  ;;  %v1628_v37 = vmin.f32 %v1626_v51, %v1525_v3  ;;  %v1494_v45 = vsel %vm3235_vm5, %v3289_v17, 1e+09  ;;  %v1526_v62 = vsel %vm1259_vm15, %v3292_v13, 1e+09  ;;  %v861_v18 = vadd.f32 %v860_v7, %v2693_v61 }
 0x11e   : > { %vm3308_vm1 = vmxor %vm1176_vm7, %vm1209_vm6  ;;  %v1649_v20 = vmin.f32 %v1647_v42, %v1494_v45  ;;  %v1667_v39 = vmin.f32 %v1665_v59, %v1526_v62  ;;  %v1495_v3 = vsel %vm3267_vm12, %v3301_v53, 1e+09  ;;  %v3329_v51 = vadd.f32 %v2767_v28, %v859_v43  ;;  %v776_v43 = vpop.f32.mrb[23].mxu0  ;;  %v872_v45 = vpop.f32.mrb[23].mxu1 }
 0x11f   : > { %vm3321_vm13 = vmxor %vm1177_vm3, %vm1208_vm4  ;;  %v3339_v17 = vmin.f32 %v1611_v31, %v1495_v3  ;;  %v765_v42 = vadd.f32 %v764_v2, %v2645_v46  ;;  %v769_v59 = vadd.f32 %v768_v4, %v2653_v48  ;;  %vm1194_vm12 = vcmp.eq.s32.totalorder %v3146_v57, 1  ;;  %v3358_v2 = vpop.permute.xlu1 %1278  ;;  %v3360_v7 = vpop.permute.xlu0 %1284 }
 0x120   : > { %4280 = vst [vmem:[#allocation41_spill] sm:$0xff] %v3329_v51  ;;  %vm3335_vm7 = vmxor %vm1192_vm0, %vm1208_vm4  ;;  %v865_v61 = vadd.f32 %v864_v41, %v2701_v0  ;;  %v771_v31 = vadd.f32 %v770_v19, %v2653_v48  ;;  %v3375_v48 = vadd.f32 %v2774_v33, %v861_v18  ;;  %vm1370_vm11 = vcmp.eq.s32.totalorder %v1276_v5, 1  ;;  %v780_v18 = vpop.f32.mrb[24].mxu0  ;;  %v876_v25 = vpop.f32.mrb[24].mxu1 }
 0x121   : > { %vm3348_vm5 = vmxor %vm1177_vm3, %vm1209_vm6  ;;  %v1527_v46 = vsel %vm3335_vm7, %v3329_v51, 1e+09  ;;  %v3372_v13 = vadd.f32 %v2774_v33, %v765_v42  ;;  %v3378_v41 = vadd.f32 %v2767_v28, %v769_v59  ;;  %v867_v42 = vadd.f32 %v866_v30, %v2701_v0  ;;  %v3427_v50 = vpop.f32.mrb[25].mxu1 }
 0x122   : > { %vm3366_vm3 = vmxor %vm1178_vm14, %vm1208_vm4  ;;  %v1630_v4 = vmin.f32 %v1628_v37, %v1527_v46  ;;  %4287 = vst [vmem:[#allocation42_spill] sm:$0xff] %v3375_v48  ;;  %v3393_v37 = vadd.f32 %v2767_v28, %v865_v61  ;;  %v3396_v3 = vadd.f32 %v2774_v33, %v771_v31  ;;  %v775_v30 = vadd.f32 %v774_v44, %v2651_v47 }
 0x123   : > { %4288 = vst [vmem:[#allocation43_spill] sm:$0xff] %v3378_v41  ;;  %vm3384_vm15 = vmxor %vm1178_vm14, %vm1209_vm6  ;;  %v1496_v52 = vsel %vm3308_vm1, %v3372_v13, 1e+09  ;;  %v1497_v0 = vsel %vm3321_vm13, %v3378_v41, 1e+09  ;;  %v3459_v62 = vpop.permute.xlu0 %1290  ;;  %v871_v59 = vadd.f32 %v870_v32, %v2699_v63  ;;  %v4324_v41 = vld [vmem:[#allocation18_spill] sm:$0xff] }
 0x124   : > { %vm1261_vm7 = vmxor %vm1192_vm0, %vm1209_vm6  ;;  %4291 = vst [vmem:[#allocation44_spill] sm:$0xff] %v3393_v37  ;;  %vm1195_vm0 = vcmp.eq.s32.totalorder %v3205_v12, 1  ;;  %v1650_v61 = vmin.f32 %v3239_v16, %v1496_v52  ;;  %v1614_v51 = vmin.f32 %v1612_v15, %v1497_v0  ;;  %v1498_v15 = vsel %vm3348_vm5, %v3396_v3, 1e+09 }
 0x125   : > { %4292 = vst [vmem:[#allocation45_spill] sm:$0xff] %v3396_v3  ;;  %vm3403_vm14 = vmxor %vm1193_vm2, %vm1208_vm4  ;;  %v1528_v46 = vsel %vm1261_vm7, %v3375_v48, 1e+09  ;;  %v782_v48 = vpop.f32.mrb[25].mxu0  ;;  %v3455_v52 = vadd.f32 %v2767_v28, %v775_v30  ;;  %v3469_v0 = vmin.f32 %v1649_v20, %v1498_v15  ;;  %v3477_v3 = vpop.f32.mrb[26].mxu1 }
 0x126   : > { %v1669_v31 = vmin.f32 %v1667_v39, %v1528_v46  ;;  %v1529_v55 = vsel %vm3403_vm14, %v3393_v37, 1e+09  ;;  %vm3423_vm1 = vmxor %vm1370_vm11, %vm1411_vm8  ;;  %v3442_v39 = vadd.f32 %v2774_v33, %v867_v42  ;;  %v3457_v46 = vpop.permute.xlu1 %1281  ;;  %v1632_v42 = vmin.f32 %v1630_v4, %v1614_v51  ;;  %v3475_v37 = vpop.f32.mrb[26].mxu0 }
 0x127   : > { %vm3433_vm13 = vmxor %vm1179_vm9, %vm1208_vm4  ;;  %4302 = vst [vmem:[#allocation47_spill] sm:$0xff] %v3455_v52  ;;  %v1499_v32 = vsel %vm3366_vm3, %v3455_v52, 1e+09  ;;  %v777_v51 = vadd.f32 %v776_v43, %v2651_v47  ;;  %v873_v4 = vadd.f32 %v872_v45, %v2699_v63  ;;  %v3495_v15 = vpop.f32.mrb[27].mxu0  ;;  %v3497_v30 = vpop.f32.mrb[27].mxu1  ;;  %v3509_v47 = vadd.f32 %v2767_v28, %v871_v59 }
 0x128   : > { %4299 = vst [vmem:[#allocation46_spill] sm:$0xff] %v3442_v39  ;;  %vm3447_vm14 = vmxor %vm1370_vm11, %vm1412_vm10  ;;  %v1634_v5 = vmin.f32 %v1632_v42, %v1529_v55  ;;  %v1615_v24 = vmin.f32 %v3339_v17, %v1499_v32  ;;  %vm1371_vm11 = vcmp.eq.s32.totalorder %v3358_v2, 1  ;;  %v3529_v17 = vpop.permute.xlu0 %1296  ;;  %v4316_v2 = vld [vmem:[#allocation8_spill] sm:$0xff] }
 0x129   : > { %vm3465_vm5 = vmxor %vm1193_vm2, %vm1209_vm6  ;;  %4309 = vst [vmem:[#allocation48_spill] sm:$0xff] %v3509_v47  ;;  %v3520_v43 = vadd.f32 %v2774_v33, %v777_v51  ;;  %v3523_v45 = vadd.f32 %v2774_v33, %v873_v4  ;;  %v781_v42 = vadd.f32 %v780_v18, %v4316_v2  ;;  %v3543_v51 = vpop.f32.mrb[28].mxu0  ;;  %v3545_v4 = vpop.f32.mrb[28].mxu1  ;;  %v4320_v18 = vld [vmem:[#allocation16_spill] sm:$0xff] }
 0x12a   : > { %vm3483_vm2 = vmxor %vm1179_vm9, %vm1209_vm6  ;;  %v1530_v20 = vsel %vm3465_vm5, %v3442_v39, 1e+09  ;;  %vm1373_vm5 = vcmp.eq.s32.totalorder %v3360_v7, 1  ;;  %v3527_v55 = vpop.permute.xlu1 %1287  ;;  %v1619_v57 = vmin.f32 %v1615_v24, %v1634_v5  ;;  %v3582_v59 = vpop.f32.mrb[29].mxu0  ;;  %v4339_v7 = vld [vmem:[#allocation7_spill] sm:$0xff] }
 0x12b   : > { %vm3503_vm9 = vmxor %vm1194_vm12, %vm1208_vm4  ;;  %v1671_v39 = vmin.f32 %v1669_v31, %v1530_v20  ;;  %4312 = vst [vmem:[#allocation49_spill] sm:$0xff] %v3520_v43  ;;  %v4317_v20 = vld [vmem:[#allocation12_spill] sm:$0xff]  ;;  %v1500_v5 = vsel %vm3384_vm15, %v3520_v43, 1e+09  ;;  %vm4321_vm15 = vcmp.eq.s32.totalorder %v2784_v29, 1 }
 0x12c   : > { %vm3515_vm3 = vmxor %vm1194_vm12, %vm1209_vm6  ;;  %4313 = vst [vmem:[#allocation50_spill] sm:$0xff] %v3523_v45  ;;  %v1531_v31 = vsel %vm3503_vm9, %v3509_v47, 1e+09  ;;  %v877_v32 = vadd.f32 %v876_v25, %v4317_v20  ;;  %v783_v47 = vadd.f32 %v782_v48, %v4316_v2  ;;  %v3580_v48 = vadd.f32 %v2767_v28, %v781_v42  ;;  %v3584_v2 = vpop.f32.mrb[29].mxu1  ;;  %v3613_v24 = vpop.permute.xlu0 %1302 }
 0x12d   : > { %vm3537_vm12 = vmxor %vm1371_vm11, %vm1411_vm8  ;;  %v1532_v22 = vsel %vm3515_vm3, %v3523_v45, 1e+09  ;;  %vm1197_vm3 = vcmp.eq.s32.totalorder %v3260_v6, 1  ;;  %v1621_v63 = vmin.f32 %v1619_v57, %v1531_v31  ;;  %v1652_v45 = vmin.f32 %v1650_v61, %v1500_v5  ;;  %v4361_v6 = vld [vmem:[#allocation9_spill] sm:$0xff] }
 0x12e   : > { %vm3555_vm9 = vmxor %vm1371_vm11, %vm1412_vm10  ;;  %v1543_v25 = vsel %vm3537_vm12, %v4320_v18, 1e+09  ;;  %v3604_v31 = vadd.f32 %v2767_v28, %v877_v32  ;;  %v3607_v42 = vadd.f32 %v2774_v33, %v783_v47  ;;  %v879_v29 = vadd.f32 %v3427_v50, %v4317_v20  ;;  %v3611_v5 = vpop.permute.xlu1 %1293  ;;  %v3629_v20 = vpop.f32.mrb[30].mxu0 }
 0x12f   : > { %vm3567_vm7 = vmxor %vm4321_vm15, %vm1208_vm4  ;;  %v1544_v43 = vsel %vm3555_vm9, %v4324_v41, 1e+09  ;;  %v1501_v50 = vsel %vm3433_vm13, %v3580_v48, 1e+09  ;;  %v3631_v18 = vpop.f32.mrb[30].mxu1 }
 0x130   : > { %vm1419_vm11 = vmxor %vm1373_vm5, %vm1411_vm8  ;;  %4330 = vst [vmem:[#allocation8_spill] sm:$0xff] %v3604_v31  ;;  %v1502_v16 = vsel %vm3483_vm2, %v3607_v42, 1e+09  ;;  %v3649_v41 = vpop.f32.mrb[31].mxu1  ;;  %vm1372_vm2 = vcmp.eq.s32.totalorder %v3457_v46, 1 }
 0x131   : > { %vm4325_vm12 = vmmov %vm4321_vm15  ;;  %v1547_v57 = vsel %vm1419_vm11, %v2944_v35, 1e+09  ;;  %v1656_v35 = vmin.f32 %v1652_v45, %v1671_v39  ;;  %v1623_v45 = vmin.f32 %v1621_v63, %v1501_v50  ;;  %4335 = vst [vmem:[#allocation12_spill] sm:$0xff] %v3649_v41  ;;  %v1653_v63 = vmin.f32 %v3469_v0, %v1502_v16  ;;  %v4340_v50 = vld [vmem:[#allocation11_spill] sm:$0xff]  ;;  %v3673_v0 = vpop.permute.xlu0 %1308 }
 0x132   : > { %vm3590_vm15 = vmxor %vm4325_vm12, %vm1209_vm6  ;;  %v1706_v32 = vmin.f32 %v1543_v25, %v1547_v57  ;;  %v3647_v25 = vpop.f32.mrb[31].mxu0  ;;  %v3661_v57 = vadd.f32 %v2774_v33, %v879_v29 }
 0x133   : > { %vm3598_vm9 = vmxor %vm1373_vm5, %vm1412_vm10 }
 0x134   : > { %vm3619_vm5 = vmxor %vm1195_vm0, %vm1208_vm4  ;;  %v1548_v47 = vsel %vm3598_vm9, %v2964_v8, 1e+09  ;;  %vm1375_vm9 = vcmp.eq.s32.totalorder %v3459_v62, 1 }
 0x135   : > { %vm3637_vm11 = vmxor %vm1195_vm0, %vm1209_vm6  ;;  %v1743_v39 = vmin.f32 %v1544_v43, %v1548_v47  ;;  %v1533_v8 = vsel %vm3619_vm5, %v3604_v31, 1e+09  ;;  %vm4336_vm0 = vcmp.eq.s32.totalorder %v3219_v38, 1  ;;  %v1658_v43 = vmin.f32 %v1656_v35, %v1532_v22  ;;  %v3671_v22 = vpop.permute.xlu1 %1299  ;;  %v4341_v35 = vld [vmem:[#allocation23_spill] sm:$0xff] }
 0x136   : > { %vm3655_vm13 = vmxor %vm4336_vm0, %vm1208_vm4  ;;  %v1625_v40 = vmin.f32 %v1623_v45, %v1533_v8  ;;  %v787_v47 = vadd.f32 %v3475_v37, %v4339_v7  ;;  %v883_v31 = vadd.f32 %v3477_v3, %v4340_v50  ;;  %v1534_v46 = vsel %vm3637_vm11, %v3661_v57, 1e+09  ;;  %v4342_v8 = vld [vmem:[#allocation25_spill] sm:$0xff] }
 0x137   : > { %vm1417_vm12 = vmxor %vm1372_vm2, %vm1411_vm8  ;;  %v1660_v29 = vmin.f32 %v1658_v43, %v1653_v63  ;;  %v789_v37 = vadd.f32 %v3495_v15, %v4339_v7  ;;  %v4343_v3 = vsel %vm3423_vm1, %v2780_v14, 1e+09  ;;  %v4344_v15 = vsel %vm3447_vm14, %v2796_v54, 1e+09 }
 0x138   : > { %vm1418_vm5 = vmxor %vm1372_vm2, %vm1412_vm10  ;;  %v1545_v45 = vsel %vm1417_vm12, %v4341_v35, 1e+09  ;;  %v3693_v52 = vadd.f32 %v2767_v28, %v787_v47  ;;  %v3696_v43 = vadd.f32 %v2767_v28, %v883_v31  ;;  %vm4345_vm0 = vcmp.eq.s32.totalorder %v2829_v26, 1 }
 0x139   : > { %v1546_v16 = vsel %vm1418_vm5, %v4342_v8, 1e+09  ;;  %v1705_v41 = vmin.f32 %v4343_v3, %v1545_v45  ;;  %vm1423_vm11 = vmxor %vm1375_vm9, %vm1411_vm8  ;;  %v1662_v63 = vmin.f32 %v1660_v29, %v1534_v46  ;;  %v3708_v7 = vadd.f32 %v2774_v33, %v789_v37  ;;  %v3725_v47 = vpop.permute.xlu1 %1305  ;;  %v3727_v29 = vpop.permute.xlu0 %1314 }
 0x13a   : > { %v1742_v36 = vmin.f32 %v4344_v15, %v1546_v16  ;;  %vm1424_vm1 = vmxor %vm1375_vm9, %vm1412_vm10  ;;  %v1551_v14 = vsel %vm1423_vm11, %v3068_v11, 1e+09  ;;  %v1503_v62 = vsel %vm3567_vm7, %v3693_v52, 1e+09  ;;  %v1535_v11 = vsel %vm3655_vm13, %v3696_v43, 1e+09 }
 0x13b   : > { %vm3714_vm2 = vmxor %vm4345_vm0, %vm1208_vm4  ;;  %v1552_v54 = vsel %vm1424_vm1, %v3095_v58, 1e+09  ;;  %v1708_v44 = vmin.f32 %v1706_v32, %v1551_v14  ;;  %vm4351_vm7 = vcmp.eq.s32.totalorder %v3219_v38, 1  ;;  %v1627_v32 = vmin.f32 %v1625_v40, %v1503_v62 }
 0x13c   : > { %vm4348_vm14 = vmmov %vm4345_vm0  ;;  %v1745_v19 = vmin.f32 %v1743_v39, %v1552_v54  ;;  %v1504_v12 = vsel %vm3590_vm15, %v3708_v7, 1e+09  ;;  %v885_v26 = vadd.f32 %v3497_v30, %v4340_v50  ;;  %vm1374_vm5 = vcmp.eq.s32.totalorder %v3527_v55, 1  ;;  %v4356_v39 = vld [vmem:[#allocation10_spill] sm:$0xff] }
 0x13d   : > { %vm3733_vm12 = vmxor %vm4348_vm14, %vm1209_vm6  ;;  %v1664_v38 = vmin.f32 %v1662_v63, %v1504_v12  ;;  %vm1377_vm11 = vcmp.eq.s32.totalorder %v3529_v17, 1  ;;  %v793_v61 = vadd.f32 %v3543_v51, %v4356_v39  ;;  %v1629_v40 = vmin.f32 %v1627_v32, %v1535_v11  ;;  %v4357_v30 = vld [vmem:[#allocation14_spill] sm:$0xff]  ;;  %v3780_v16 = vpop.permute.xlu1 %1311  ;;  %v3782_v3 = vpop.permute.xlu0 %1320  ;;  %v4360_v12 = vld [vmem:[#allocation17_spill] sm:$0xff] }
 0x13e   : > { %vm3741_vm9 = vmxor %vm4351_vm7, %vm1209_vm6  ;;  %v3763_v45 = vadd.f32 %v2774_v33, %v885_v26  ;;  %v889_v50 = vadd.f32 %v3545_v4, %v4357_v30  ;;  %v795_v37 = vadd.f32 %v3582_v59, %v4356_v39  ;;  %v891_v8 = vadd.f32 %v3584_v2, %v4357_v30 }
 0x13f   : > { %vm3754_vm13 = vmxor %vm1197_vm3, %vm1208_vm4  ;;  %v3775_v51 = vadd.f32 %v2767_v28, %v793_v61  ;;  %vm1376_vm0 = vcmp.eq.s32.totalorder %v3611_v5, 1  ;;  %v799_v35 = vadd.f32 %v3629_v20, %v4361_v6 }
 0x140   : > { %vm1421_vm15 = vmxor %vm1374_vm5, %vm1411_vm8  ;;  %v1536_v4 = vsel %vm3741_vm9, %v3763_v45, 1e+09 }
 0x141   : > { %vm1422_vm1 = vmxor %vm1374_vm5, %vm1412_vm10  ;;  %v1549_v55 = vsel %vm1421_vm15, %v3004_v21, 1e+09  ;;  %v3793_v21 = vadd.f32 %v2767_v28, %v889_v50  ;;  %v1666_v2 = vmin.f32 %v1664_v38, %v1536_v4  ;;  %v3822_v31 = vpop.permute.xlu1 %1317  ;;  %vm1379_vm5 = vcmp.eq.s32.totalorder %v3613_v24, 1  ;;  %v3834_v5 = vpop.permute.xlu0 %1326 }
 0x142   : > { %v1550_v59 = vsel %vm1422_vm1, %v3036_v56, 1e+09  ;;  %v1707_v63 = vmin.f32 %v1705_v41, %v1549_v55  ;;  %vm1427_vm14 = vmxor %vm1377_vm11, %vm1411_vm8  ;;  %v1505_v56 = vsel %vm3714_vm2, %v3775_v51, 1e+09  ;;  %v801_v24 = vadd.f32 %v3647_v25, %v4361_v6  ;;  %v4362_v55 = vld [vmem:[#allocation37_spill] sm:$0xff] }
 0x143   : > { %v1744_v15 = vmin.f32 %v1742_v36, %v1550_v59  ;;  %vm1428_vm7 = vmxor %vm1377_vm11, %vm1412_vm10  ;;  %v1555_v14 = vsel %vm1427_vm14, %v3188_v49, 1e+09  ;;  %v1631_v62 = vmin.f32 %v1629_v40, %v1505_v56  ;;  %v1537_v11 = vsel %vm3754_vm13, %v3793_v21, 1e+09 }
 0x144   : > { %v1556_v41 = vsel %vm1428_vm7, %v3201_v10, 1e+09  ;;  %v1710_v54 = vmin.f32 %v1708_v44, %v1555_v14  ;;  %vm1425_vm9 = vmxor %vm1376_vm0, %vm1411_vm8  ;;  %v3812_v49 = vadd.f32 %v2774_v33, %v795_v37  ;;  %v3815_v36 = vadd.f32 %v2774_v33, %v891_v8  ;;  %v4365_v14 = vld [vmem:[#allocation49_spill] sm:$0xff] }
 0x145   : > { %v1747_v17 = vmin.f32 %v1745_v19, %v1556_v41  ;;  %vm1426_vm2 = vmxor %vm1376_vm0, %vm1412_vm10  ;;  %v1553_v10 = vsel %vm1425_vm9, %v3114_v9, 1e+09  ;;  %v1633_v58 = vmin.f32 %v1631_v62, %v1537_v11  ;;  %vm1182_vm11 = vcmp.eq.s32.totalorder %v4360_v12, 1  ;;  %v3856_v20 = vpop.permute.xlu1 %1323  ;;  %v3874_v37 = vpop.permute.xlu0 %1332  ;;  %v4370_v44 = vld [vmem:[#allocation45_spill] sm:$0xff] }
 0x146   : > { %vm3828_vm13 = vmxor %vm1197_vm3, %vm1209_vm6  ;;  %v1554_v19 = vsel %vm1426_vm2, %v3172_v60, 1e+09  ;;  %v1709_v32 = vmin.f32 %v1707_v63, %v1553_v10  ;;  %v1506_v9 = vsel %vm3733_vm12, %v3812_v49, 1e+09  ;;  %v3854_v40 = vadd.f32 %v2767_v28, %v799_v35 }
 0x147   : > { %v1746_v26 = vmin.f32 %v1744_v15, %v1554_v19  ;;  %vm1431_vm3 = vmxor %vm1379_vm5, %vm1411_vm8  ;;  %v1668_v38 = vmin.f32 %v1666_v2, %v1506_v9  ;;  %v1538_v46 = vsel %vm3828_vm13, %v3815_v36, 1e+09  ;;  %v938_v25 = vadd.f32 %v2774_v33, %v801_v24  ;;  %v4364_v2 = vld [vmem:[#allocation47_spill] sm:$0xff] }
 0x148   : > { %vm1432_vm15 = vmxor %vm1379_vm5, %vm1412_vm10  ;;  %v1559_v60 = vsel %vm1431_vm3, %v3301_v53, 1e+09  ;;  %vm1378_vm0 = vcmp.eq.s32.totalorder %v3671_v22, 1  ;;  %vm1381_vm14 = vcmp.eq.s32.totalorder %v3673_v0, 1  ;;  %vm1380_vm2 = vcmp.eq.s32.totalorder %v3725_v47, 1  ;;  %v4363_v0 = vld [vmem:[#allocation39_spill] sm:$0xff] }
 0x149   : > { %v1560_v39 = vsel %vm1432_vm15, %v3372_v13, 1e+09  ;;  %v1712_v61 = vmin.f32 %v1710_v54, %v1559_v60  ;;  %vm1240_vm12 = vmxor %vm1182_vm11, %vm1208_vm4  ;;  %v1670_v53 = vmin.f32 %v1668_v38, %v1538_v46  ;;  %v3882_v22 = vpop.permute.xlu1 %1329  ;;  %vm1382_vm15 = vcmp.eq.s32.totalorder %v3780_v16, 1  ;;  %v4366_v54 = vld [vmem:[#allocation43_spill] sm:$0xff] }
 0x14a   : > { %v1749_v30 = vmin.f32 %v1747_v17, %v1560_v39  ;;  %vm1241_vm1 = vmxor %vm1182_vm11, %vm1209_vm6  ;;  %v1507_v13 = vsel %vm1240_vm12, %v3854_v40, 1e+09  ;;  %vm1383_vm11 = vcmp.eq.s32.totalorder %v3727_v29, 1  ;;  %v4367_v17 = vlaneseq }
 0x14b   : > { %v3870_v28 = vmin.f32 %v1633_v58, %v1507_v13  ;;  %v1508_v50 = vsel %vm1241_vm1, %v938_v25, 1e+09  ;;  %vm1429_vm7 = vmxor %vm1378_vm0, %vm1411_vm8  ;;  %v2181_v12 = vmov 1e+09  }
 0x14c   : > { %v3876_v33 = vmin.f32 %v1670_v53, %v1508_v50  ;;  %vm1430_vm9 = vmxor %vm1378_vm0, %vm1412_vm10  ;;  %v1557_v8 = vsel %vm1429_vm7, %v4362_v55, 1e+09  ;;  %vm3901_vm1 = vcmp.lt.s32.totalorder %v4367_v17, 256  ;;  %vm1385_vm7 = vcmp.eq.s32.totalorder %v3782_v3, 1  ;;  %v4374_v55 = vld [vmem:[#allocation20_spill] sm:$0xff] }
 0x14d   : > { %v1558_v4 = vsel %vm1430_vm9, %v4363_v0, 1e+09  ;;  %v1711_v59 = vmin.f32 %v1709_v32, %v1557_v8  ;;  %vm1435_vm13 = vmxor %vm1381_vm14, %vm1411_vm8  ;;  %v3898_v11 = vpop.permute.xlu1 %1335  ;;  %v3910_v32 = vpop.permute.xlu0 %1338  ;;  %379 = vst.msk [vmem:[#allocation2] sm:$0x3] %vm3901_vm1, %v2181_v12 }
 0x14e   : > { %v1748_v63 = vmin.f32 %v1746_v26, %v1558_v4  ;;  %vm1436_vm5 = vmxor %vm1381_vm14, %vm1412_vm10  ;;  %v1563_v15 = vsel %vm1435_vm13, %v4364_v2, 1e+09  ;;  %380 = vst.msk [vmem:[#allocation3] sm:$0x3] %vm3901_vm1, %v2181_v12  ;;  %vm1384_vm13 = vcmp.eq.s32.totalorder %v3822_v31, 1  ;;  %v4376_v2 = vld [vmem:[#allocation28_spill] sm:$0xff] }
 0x14f   : > { %v1564_v56 = vsel %vm1436_vm5, %v4365_v14, 1e+09  ;;  %v1714_v41 = vmin.f32 %v1712_v61, %v1563_v15  ;;  %vm1433_vm3 = vmxor %vm1380_vm2, %vm1411_vm8 }
 0x150   : > { %v1751_v47 = vmin.f32 %v1749_v30, %v1564_v56  ;;  %vm1434_vm12 = vmxor %vm1380_vm2, %vm1412_vm10  ;;  %v1561_v62 = vsel %vm1433_vm3, %v4366_v54, 1e+09  ;;  %vm1387_vm3 = vcmp.eq.s32.totalorder %v3834_v5, 1  ;;  %v4372_v30 = vld [vmem:[#allocation22_spill] sm:$0xff]  ;;  %v4377_v56 = vld [vmem:[#allocation24_spill] sm:$0xff] }
 0x151   : > { %v1562_v58 = vsel %vm1434_vm12, %v4370_v44, 1e+09  ;;  %v1713_v19 = vmin.f32 %v1711_v59, %v1561_v62  ;;  %vm1439_vm0 = vmxor %vm1383_vm11, %vm1411_vm8  ;;  %v4375_v59 = vld [vmem:[#allocation27_spill] sm:$0xff] }
 0x152   : > { %v1750_v9 = vmin.f32 %v1748_v63, %v1562_v58  ;;  %vm1440_vm14 = vmxor %vm1383_vm11, %vm1412_vm10  ;;  %v1567_v26 = vsel %vm1439_vm0, %v3693_v52, 1e+09  ;;  %vm1386_vm0 = vcmp.eq.s32.totalorder %v3856_v20, 1  ;;  %v4373_v20 = vld [vmem:[#allocation19_spill] sm:$0xff] }
 0x153   : > { %v1568_v6 = vsel %vm1440_vm14, %v3708_v7, 1e+09  ;;  %v1716_v35 = vmin.f32 %v1714_v41, %v1567_v26  ;;  %vm1437_vm9 = vmxor %vm1382_vm15, %vm1411_vm8  ;;  %v3936_v7 = vpop.permute.xlu1 %1341  ;;  %v4379_v58 = vld [vmem:[#allocation31_spill] sm:$0xff] }
 0x154   : > { %v1753_v38 = vmin.f32 %v1751_v47, %v1568_v6  ;;  %vm1438_vm2 = vmxor %vm1382_vm15, %vm1412_vm10  ;;  %v1565_v29 = vsel %vm1437_vm9, %v3580_v48, 1e+09  ;;  %vm1389_vm9 = vcmp.eq.s32.totalorder %v3874_v37, 1  ;;  %v4378_v47 = vld [vmem:[#allocation26_spill] sm:$0xff]  ;;  %v4381_v6 = vld [vmem:[#allocation29_spill] sm:$0xff] }
 0x155   : > { %v1566_v52 = vsel %vm1438_vm2, %v3607_v42, 1e+09  ;;  %v1715_v3 = vmin.f32 %v1713_v19, %v1565_v29  ;;  %vm1443_vm5 = vmxor %vm1385_vm7, %vm1411_vm8  ;;  %v1345_v42 = vpop.permute.xlu0 %1344 }
 0x156   : > { %v1752_v60 = vmin.f32 %v1750_v9, %v1566_v52  ;;  %vm1444_vm11 = vmxor %vm1385_vm7, %vm1412_vm10  ;;  %v1571_v24 = vsel %vm1443_vm5, %v3854_v40, 1e+09  ;;  %v4371_v40 = vld [vmem:[#allocation21_spill] sm:$0xff]  ;;  %vm1388_vm5 = vcmp.eq.s32.totalorder %v3882_v22, 1 }
 0x157   : > { %v1572_v16 = vsel %vm1444_vm11, %v938_v25, 1e+09  ;;  %v1718_v48 = vmin.f32 %v1716_v35, %v1571_v24  ;;  %vm1441_vm15 = vmxor %vm1384_vm13, %vm1411_vm8 }
 0x158   : > { %v1755_v31 = vmin.f32 %v1753_v38, %v1572_v16  ;;  %vm1442_vm12 = vmxor %vm1384_vm13, %vm1412_vm10  ;;  %v1569_v46 = vsel %vm1441_vm15, %v3775_v51, 1e+09  ;;  %v3958_v51 = vpop.permute.xlu1 %1347  ;;  %vm1391_vm15 = vcmp.eq.s32.totalorder %v3910_v32, 1  ;;  %v4380_v32 = vld [vmem:[#allocation32_spill] sm:$0xff]  ;;  %v4382_v38 = vld [vmem:[#allocation30_spill] sm:$0xff] }
 0x159   : > { %v1570_v39 = vsel %vm1442_vm12, %v3812_v49, 1e+09  ;;  %v1717_v61 = vmin.f32 %v1715_v3, %v1569_v46  ;;  %vm1447_vm14 = vmxor %vm1387_vm3, %vm1411_vm8  ;;  %v1351_v37 = vpop.permute.xlu0 %1350  ;;  %v4384_v16 = vld [vmem:[#allocation36_spill] sm:$0xff]  ;;  %v4385_v46 = vld [vmem:[#allocation33_spill] sm:$0xff] }
 0x15a   : > { %v1754_v5 = vmin.f32 %v1752_v60, %v1570_v39  ;;  %vm1448_vm7 = vmxor %vm1387_vm3, %vm1412_vm10  ;;  %v1575_v53 = vsel %vm1447_vm14, %v4371_v40, 1e+09  ;;  %vm1390_vm14 = vcmp.eq.s32.totalorder %v3898_v11, 1  ;;  %v4383_v60 = vld [vmem:[#allocation35_spill] sm:$0xff] }
 0x15b   : > { %v1576_v25 = vsel %vm1448_vm7, %v4372_v30, 1e+09  ;;  %v1720_v13 = vmin.f32 %v1718_v48, %v1575_v53  ;;  %vm1445_vm2 = vmxor %vm1386_vm0, %vm1411_vm8 }
 0x15c   : > { %v1757_v49 = vmin.f32 %v1755_v31, %v1576_v25  ;;  %vm1446_vm13 = vmxor %vm1386_vm0, %vm1412_vm10  ;;  %v1573_v50 = vsel %vm1445_vm2, %v4373_v20, 1e+09  ;;  %v1354_v17 = vpop.permute.xlu1 %1353  ;;  %vm1393_vm2 = vcmp.eq.s32.totalorder %v1345_v42, 1  ;;  %v4387_v25 = vld [vmem:[#allocation41_spill] sm:$0xff] }
 0x15d   : > { %v1574_v8 = vsel %vm1446_vm13, %v4374_v55, 1e+09  ;;  %v1719_v0 = vmin.f32 %v1717_v61, %v1573_v50  ;;  %vm1451_vm11 = vmxor %vm1389_vm9, %vm1411_vm8  ;;  %v1357_v11 = vpop.permute.xlu0 %1356  ;;  %v4386_v61 = vld [vmem:[#allocation34_spill] sm:$0xff] }
 0x15e   : > { %v1756_v4 = vmin.f32 %v1754_v5, %v1574_v8  ;;  %vm1452_vm3 = vmxor %vm1389_vm9, %vm1412_vm10  ;;  %v1579_v63 = vsel %vm1451_vm11, %v4375_v59, 1e+09  ;;  %vm1392_vm11 = vcmp.eq.s32.totalorder %v3936_v7, 1  ;;  %v4389_v55 = vld [vmem:[#allocation38_spill] sm:$0xff] }
 0x15f   : > { %v1580_v15 = vsel %vm1452_vm3, %v4376_v2, 1e+09  ;;  %v1722_v14 = vmin.f32 %v1720_v13, %v1579_v63  ;;  %vm1449_vm12 = vmxor %vm1388_vm5, %vm1411_vm8  ;;  %v4391_v2 = vld [vmem:[#allocation48_spill] sm:$0xff] }
 0x160   : > { %v1759_v22 = vmin.f32 %v1757_v49, %v1580_v15  ;;  %vm1450_vm0 = vmxor %vm1388_vm5, %vm1412_vm10  ;;  %v1577_v41 = vsel %vm1449_vm12, %v4377_v56, 1e+09  ;;  %vm1395_vm12 = vcmp.eq.s32.totalorder %v1351_v37, 1  ;;  %v1360_v7 = vpop.permute.xlu1 %1359  ;;  %v4388_v49 = vld [vmem:[#allocation42_spill] sm:$0xff] }
 0x161   : > { %v1578_v54 = vsel %vm1450_vm0, %v4378_v47, 1e+09  ;;  %v1721_v62 = vmin.f32 %v1719_v0, %v1577_v41  ;;  %vm1455_vm7 = vmxor %vm1391_vm15, %vm1411_vm8  ;;  %v1363_v53 = vpop.permute.xlu0 %1362  ;;  %v4390_v0 = vld [vmem:[#allocation40_spill] sm:$0xff] }
 0x162   : > { %v1758_v44 = vmin.f32 %v1756_v4, %v1578_v54  ;;  %vm1456_vm9 = vmxor %vm1391_vm15, %vm1412_vm10  ;;  %v1583_v19 = vsel %vm1455_vm7, %v4379_v58, 1e+09  ;;  %vm1394_vm7 = vcmp.eq.s32.totalorder %v3958_v51, 1  ;;  %v4393_v54 = vld [vmem:[#allocation44_spill] sm:$0xff] }
 0x163   : > { %v1584_v12 = vsel %vm1456_vm9, %v4380_v32, 1e+09  ;;  %v1724_v9 = vmin.f32 %v1722_v14, %v1583_v19  ;;  %vm1453_vm13 = vmxor %vm1390_vm14, %vm1411_vm8  ;;  %v4392_v14 = vld [vmem:[#allocation50_spill] sm:$0xff]  ;;  %v4395_v19 = vld [vmem:[#allocation13_spill] sm:$0xff] }
 0x164   : > { %v1761_v26 = vmin.f32 %v1759_v22, %v1584_v12  ;;  %vm1454_vm5 = vmxor %vm1390_vm14, %vm1412_vm10  ;;  %v1581_v35 = vsel %vm1453_vm13, %v4381_v6, 1e+09  ;;  %vm1397_vm13 = vcmp.eq.s32.totalorder %v1357_v11, 1  ;;  %v1166_v59 = vpop.permute.xlu1 %1165  ;;  %v895_v32 = vadd.f32 %v3631_v18, %v4395_v19  ;;  %v4396_v11 = vld [vmem:[#allocation12_spill] sm:$0xff] }
 0x165   : > { %v1582_v29 = vsel %vm1454_vm5, %v4382_v38, 1e+09  ;;  %v1723_v52 = vmin.f32 %v1721_v62, %v1581_v35  ;;  %vm1459_vm3 = vmxor %vm1393_vm2, %vm1411_vm8  ;;  %v1366_v41 = vpop.permute.xlu0 %1365  ;;  %v4397_v18 = vld [vmem:[#allocation8_spill] sm:$0xff] }
 0x166   : > { %v1760_v3 = vmin.f32 %v1758_v44, %v1582_v29  ;;  %vm1460_vm15 = vmxor %vm1393_vm2, %vm1412_vm10  ;;  %v1587_v24 = vsel %vm1459_vm3, %v4383_v60, 1e+09  ;;  %vm1396_vm3 = vcmp.eq.s32.totalorder %v1354_v17, 1  ;;  %v4394_v17 = vld [vmem:[#allocation46_spill] sm:$0xff] }
 0x167   : > { %v1588_v48 = vsel %vm1460_vm15, %v4384_v16, 1e+09  ;;  %v1726_v42 = vmin.f32 %v1724_v9, %v1587_v24  ;;  %vm1457_vm0 = vmxor %vm1392_vm11, %vm1411_vm8 }
 0x168   : > { %v1763_v31 = vmin.f32 %v1761_v26, %v1588_v48  ;;  %vm1458_vm14 = vmxor %vm1392_vm11, %vm1412_vm10  ;;  %v1585_v39 = vsel %vm1457_vm0, %v4385_v46, 1e+09  ;;  %vm1399_vm0 = vcmp.eq.s32.totalorder %v1363_v53, 1  ;;  %v897_v26 = vadd.f32 %v4396_v11, %v4395_v19  ;;  %v1369_v38 = vpop.permute.xlu1 %1368 }
 0x169   : > { %v1586_v5 = vsel %vm1458_vm14, %v4386_v61, 1e+09  ;;  %v1725_v40 = vmin.f32 %v1723_v52, %v1585_v39  ;;  %vm1463_vm9 = vmxor %vm1395_vm12, %vm1411_vm8 }
 0x16a   : > { %v1762_v30 = vmin.f32 %v1760_v3, %v1586_v5  ;;  %vm1464_vm2 = vmxor %vm1395_vm12, %vm1412_vm10  ;;  %v1591_v13 = vsel %vm1463_vm9, %v4387_v25, 1e+09  ;;  %vm1398_vm9 = vcmp.eq.s32.totalorder %v1360_v7, 1 }
 0x16b   : > { %v1592_v20 = vsel %vm1464_vm2, %v4388_v49, 1e+09  ;;  %v1728_v50 = vmin.f32 %v1726_v42, %v1591_v13  ;;  %vm1461_vm5 = vmxor %vm1394_vm7, %vm1411_vm8 }
 0x16c   : > { %v1765_v51 = vmin.f32 %v1763_v31, %v1592_v20  ;;  %vm1462_vm11 = vmxor %vm1394_vm7, %vm1412_vm10  ;;  %v1589_v8 = vsel %vm1461_vm5, %v4389_v55, 1e+09  ;;  %vm1400_vm5 = vcmp.eq.s32.totalorder %v1366_v41, 1  ;;  %v4398_v41 = vld [vmem:[#allocation15_spill] sm:$0xff] }
 0x16d   : > { %v1590_v37 = vsel %vm1462_vm11, %v4390_v0, 1e+09  ;;  %v1727_v4 = vmin.f32 %v1725_v40, %v1589_v8  ;;  %vm1467_vm15 = vmxor %vm1397_vm13, %vm1411_vm8 }
 0x16e   : > { %v1764_v63 = vmin.f32 %v1762_v30, %v1590_v37  ;;  %vm1468_vm12 = vmxor %vm1397_vm13, %vm1412_vm10  ;;  %v1595_v15 = vsel %vm1467_vm15, %v4391_v2, 1e+09  ;;  %vm1198_vm15 = vcmp.eq.s32.totalorder %v1166_v59, 1 }
 0x16f   : > { %v1596_v22 = vsel %vm1468_vm12, %v4392_v14, 1e+09  ;;  %v1730_v56 = vmin.f32 %v1728_v50, %v1595_v15  ;;  %vm1465_vm14 = vmxor %vm1396_vm3, %vm1411_vm8 }
 0x170   : > { %v1767_v47 = vmin.f32 %v1765_v51, %v1596_v22  ;;  %vm1466_vm7 = vmxor %vm1396_vm3, %vm1412_vm10  ;;  %v1593_v62 = vsel %vm1465_vm14, %v4393_v54, 1e+09  ;;  %vm1401_vm14 = vcmp.eq.s32.totalorder %v1369_v38, 1 }
 0x171   : > { %v1594_v44 = vsel %vm1466_vm7, %v4394_v17, 1e+09  ;;  %v1729_v58 = vmin.f32 %v1727_v4, %v1593_v62  ;;  %vm1471_vm2 = vmxor %vm1399_vm0, %vm1411_vm8 }
 0x172   : > { %v1766_v12 = vmin.f32 %v1764_v63, %v1594_v44  ;;  %vm1472_vm13 = vmxor %vm1399_vm0, %vm1412_vm10  ;;  %v1599_v9 = vsel %vm1471_vm2, %v3696_v43, 1e+09 }
 0x173   : > { %v1600_v6 = vsel %vm1472_vm13, %v3763_v45, 1e+09  ;;  %v1732_v35 = vmin.f32 %v1730_v56, %v1599_v9  ;;  %vm1469_vm11 = vmxor %vm1398_vm9, %vm1411_vm8  ;;  %v2095_v45 = vld [vmem:[%s4137_s3 + $0x10] ss:$0 sm:$0xff] }
 0x174   : > { %v1769_v29 = vmin.f32 %v1767_v47, %v1600_v6  ;;  %vm1470_vm3 = vmxor %vm1398_vm9, %vm1412_vm10  ;;  %v1597_v52 = vsel %vm1469_vm11, %v4397_v18, 1e+09  ;;  %v969_v60 = vadd.f32 %v2095_v45, %v895_v32  ;;  %v1605_v32 = vld [vmem:[#allocation2] sm:$0x3]  ;;  %v1704_v6 = vld [vmem:[#allocation3] sm:$0x3] }
 0x175   : > { %v1598_v43 = vsel %vm1470_vm3, %v3661_v57, 1e+09  ;;  %v1731_v3 = vmin.f32 %v1729_v58, %v1597_v52  ;;  %vm1473_vm12 = vmxor %vm1400_vm5, %vm1411_vm8  ;;  %v2096_v57 = vld [vmem:[%s4137_s3 + $0x18] ss:$0 sm:$0xff]  ;;  %v1803_v18 = vld [vmem:[%s2753_s11] sm:$0x3] }
 0x176   : > { %v1768_v24 = vmin.f32 %v1766_v12, %v1598_v43  ;;  %vm1474_vm0 = vmxor %vm1400_vm5, %vm1412_vm10  ;;  %v1601_v16 = vsel %vm1473_vm12, %v3793_v21, 1e+09  ;;  %v970_v48 = vadd.f32 %v2096_v57, %v897_v26  ;;  %s1816_s11 = scalar_lea.sflag [#allocation5], %s327_s27 }
 0x177   : > { %v1602_v42 = vsel %vm1474_vm0, %v3815_v36, 1e+09  ;;  %v1733_v7 = vmin.f32 %v1731_v3, %v1601_v16  ;;  %vm1272_vm7 = vmxor %vm1198_vm15, %vm1208_vm4 }
 0x178   : > { %v1770_v31 = vmin.f32 %v1768_v24, %v1602_v42  ;;  %vm1273_vm9 = vmxor %vm1198_vm15, %vm1209_vm6  ;;  %v1539_v46 = vsel %vm1272_vm7, %v969_v60, 1e+09 }
 0x179   : > { %v1636_v21 = vmin.f32 %v1539_v46, %v3870_v28  ;;  %v1540_v39 = vsel %vm1273_vm9, %v970_v48, 1e+09  ;;  %vm1475_vm2 = vmxor %vm1401_vm14, %vm1411_vm8  ;;  %v2182_v28 = vmov 1966171168  }
 0x17a   : > { %v1673_v61 = vmin.f32 %v1540_v39, %v3876_v33  ;;  %vm1476_vm13 = vmxor %vm1401_vm14, %vm1412_vm10  ;;  %v1603_v23 = vsel %vm1475_vm2, %v969_v60, 1e+09  ;;  %v1684_v20 = vunpack.c.l.s4 %v2182_v28 }
 0x17b   : > { %v1637_v36 = vrot.slane %v1636_v21, 4  ;;  %v1604_v5 = vsel %vm1476_vm13, %v970_v48, 1e+09  ;;  %v1734_v40 = vmin.f32 %v1732_v35, %v1603_v23 }
 0x17c   : > { %v1674_v53 = vrot.slane %v1673_v61, 4  ;;  %v1771_v27 = vmin.f32 %v1769_v29, %v1604_v5  ;;  %v1685_v37 = vunpack.c.0.s8 %v1684_v20  ;;  %v1802_v29 = vld [vmem:[%s2729_s9] sm:$0x3]  ;;  %s4085_s9 = scalar_lea.hbm %s4139_s5, %s2023_s8 }
 0x17d   : > { %v1638_v30 = vmin.f32 %v1636_v21, %v1637_v36  ;;  %v1735_v25 = vmin.f32 %v1733_v7, %v1734_v40  ;;  %v1810_v43 = vsub.f32 %v1802_v29, %v1803_v18 }
 0x17e   : > { %v1675_v13 = vmin.f32 %v1673_v61, %v1674_v53  ;;  %v1772_v49 = vmin.f32 %v1770_v31, %v1771_v27  ;;  %v1688_v47 = vsub.s32 %v1685_v37, %v4398_v41 }
 0x17f   : > { %v1639_v50 = vrot.slane %v1638_v30, 2  ;;  %v1736_v34 = vrot.slane %v1735_v25, 4  ;;  %v1811_v45 = vmul.f32 %v1810_v43, %v1810_v43 }
 0x180   : > { %v1676_v51 = vrot.slane %v1675_v13, 2  ;;  %v1773_v55 = vrot.slane %v1772_v49, 4 }
 0x181   : > { %v1640_v33 = vmin.f32 %v1638_v30, %v1639_v50  ;;  %v1737_v8 = vmin.f32 %v1735_v25, %v1736_v34 }
 0x182   : > { %v1677_v1 = vmin.f32 %v1675_v13, %v1676_v51  ;;  %v1774_v0 = vmin.f32 %v1772_v49, %v1773_v55 }
 0x183   : > { %v1641_v4 = vrot.slane %v1640_v33, 1  ;;  %v1738_v59 = vrot.slane %v1737_v8, 2 }
 0x184   : > { %v1678_v63 = vrot.slane %v1677_v1, 1  ;;  %v1775_v2 = vrot.slane %v1774_v0, 2 }
 0x185   : > { %v1642_v15 = vmin.f32 %v1640_v33, %v1641_v4  ;;  %v1739_v14 = vmin.f32 %v1737_v8, %v1738_v59 }
 0x186   : > { %v1679_v22 = vmin.f32 %v1677_v1, %v1678_v63  ;;  %v1776_v56 = vmin.f32 %v1774_v0, %v1775_v2 }
 0x187   : > { %v1740_v54 = vrot.slane %v1739_v14, 1 }
 0x188   : > { %v1682_v62 = vcombine.low %v1642_v15, %v1679_v22  ;;  %v1777_v17 = vrot.slane %v1776_v56, 1 }
 0x189   : > { %v1741_v44 = vmin.f32 %v1739_v14, %v1740_v54 }
 0x18a   : > { %v1778_v58 = vmin.f32 %v1776_v56, %v1777_v17  ;;  %v1689_v19 = vrot.slane %v1682_v62, %v1688_v47 }
 0x18c   : > { %v1781_v12 = vcombine.low %v1741_v44, %v1778_v58  ;;  %v1696_v9 = vrot.slane %v1689_v19, %v1688_v47 }
 0x18e   : > { %v1698_v11 = vmin.f32 %v1605_v32, %v1696_v9  ;;  %v1788_v26 = vrot.slane %v1781_v12, %v1688_v47 }
 0x190   : > { %1703 = vst.msk [vmem:[#allocation2] sm:$0x3] %vm3901_vm1, %v1698_v11  ;;  %v1795_v35 = vrot.slane %v1788_v26, %v1688_v47 }
 0x192   : > { %v1797_v38 = vmin.f32 %v1704_v6, %v1795_v35 }
 0x194   : > { %1798 = vst.msk [vmem:[#allocation3] sm:$0x3] %vm3901_vm1, %v1797_v38 }
 0x197   : > { %v1804_v52 = vld [vmem:[#allocation2] sm:$0x3] }
 0x198   : > { %vm1806_vm4 = vcmp.lt.f32.partialorder %v1804_v52, 5e+08 }
 0x199   : > { %v1808_v60 = vsel %vm1806_vm4, %v1804_v52, 0.0 }
 0x19b   : > { %v1805_v3 = vld [vmem:[#allocation3] sm:$0x3] }
 0x19c   : > { %vm1807_vm6 = vcmp.lt.f32.partialorder %v1805_v3, 5e+08 }
 0x19d   : > { %v1809_v24 = vsel %vm1807_vm6, %v1805_v3, 0.0 }
 0x19e   : > { %v1812_v16 = vadd.f32 %v1809_v24, %v1808_v60 }
 0x1a0   : > { %v1813_v57 = vmul.f32 %v1812_v16, %v1811_v45 }
 0x1a2   : > { %1814 = vst.msk [vmem:[%s329_s7] sm:$0x3] %vm3901_vm1, %v1813_v57 }
 0x1a3   : > { %2110 = shalt.err (!%p2107_p5)
}
 0x1a4   : > { %s2111_s17 = scalar_lea.hbm %s4085_s9, 32  ;;  %s2115_s27 = scalar_lea.hbm %s4139_s5, 64 }
 0x1a5   : > { %p2112_p6 = scmp.ne.s32.totalorder %s4085_s9, %s2111_s17  ;;  %p2116_p10 = scmp.lt.u32.totalorder %s4085_s9, %s4139_s5 }
 0x1a6   : > { %p2117_p11 = scmp.lt.u32.totalorder %s2115_s27, %s2111_s17  ;;  %p2119_p13 = scmp.lt.u32.totalorder %s2111_s17, %s4085_s9 }
 0x1a7   : > { %p2113_p7 = pnand %p2112_p6, %p2254_p4 }
 0x1a8   : > { %p2118_p12 = por %p2117_p11, %p2116_p10 }
 0x1a9   : > { %p2114_p9 = pneg %p2113_p7 }
 0x1aa   : > { %p2120_p0 = por %p2119_p13, %p2118_p12 }
 0x1ac   : > { %p2121_p1 = pnand %p2120_p0, %p2114_p9 }
 0x1ae   : > { %2124 = shalt.err (!%p2121_p1)
}
 0x1af   : > { %2026 = dma.vmem_to_hbm [thread:$0]  (%p2254_p4), %s4087_s10, 32, %s4085_s9, %s1816_s11  }
 0x1b0 PF: > { %p2032_p2 = scmp.ge.s32.totalorder %s2175_s23, 2  ;;  %s1844_s7 = sand.u32 1, %s2155_s18  }
 0x1b1   : > { %s1845_s12 = scalar_lea.sflag [#allocation5], %s1844_s7 }
 0x1b2   : > { %p2029_p3 = pnand %p2032_p2, %p2261_p8 }
 0x1b4   : > { %2150 = dma.done.wait (!%p2029_p3), %s1845_s12, 32  }
 0x1b5   : > { %2152 = vsyncadd (!%p2029_p3), %s1845_s12, 4294967264  ;;  %s18_s23 = sadd.s32 1, %s2175_s23   ;;  %s4399_s18 = smov %s2159_s19 }
 0x1b6   : > { %p15_p5 = scmp.ge.s32.totalorder %s18_s23, 4   ;;  %s4400_s19 = smov %s2163_s20 }
 0x1b7   : > { %s4401_s20 = smov %s2267_s6  ;;  %s4402_s21 = smov %s2171_s22 }
 0x1b8   : > { %s4403_s22 = smov %s4405_s26  ;;  %17 = sbr.rel (!%p15_p5) target bundleno = 4 (0x4), region = 95 }
 0x1bf   :  { %1850 = vsyncpa [#allocation5], 1 }
 0x1c0   :  { %1852 = vsyncpa [#allocation5 + $0x1], 1 }

</bundles_post_ra>
